<compile_context>
chip_gen: v6e
topology: v6e:2x2x1
jax: 0.10.0
libtpu: 0.0.40
codegen_flags: <defaults>
</compile_context>

<pallas_src>
import functools
import math

import jax
import jax.numpy as jnp
from jax import lax
from jax.experimental import pallas as pl
from jax.experimental.pallas import tpu as pltpu

K = 7          # kernel_size
PAD = 3        # padding for kernel_size == 7
STRIP = 512    # lane-strip size for the conv finalize (bounds vreg pressure)


def _round_up(x, m):
    return (x + m - 1) // m * m


def _vmem_capacity_bytes():
    """Per-generation VMEM capacity with a generation-aware fallback."""
    try:
        info = pltpu.get_tpu_info()
        cap = getattr(info, "vmem_capacity_bytes", None)
        if cap:
            return int(cap)
    except Exception:
        pass
    kind = ""
    try:
        kind = jax.devices()[0].device_kind.lower()
    except Exception:
        pass
    if "v2" in kind or "v3" in kind:
        return 16 * 1024 * 1024
    if "v4" in kind or "v5" in kind or "v6" in kind:
        return 128 * 1024 * 1024
    return 64 * 1024 * 1024    # v7x / unknown: assume the smallest modern part


def _pick_channel_tile(C, HW, itemsize, pack, budget_bytes):
    """Largest channel tile (multiple of `pack`, or full C) whose double-buffered
    (TC, HW) native-dtype input block fits `budget_bytes`."""
    if C <= pack or 2 * C * HW * itemsize <= budget_bytes:
        return C
    cap = max(pack, budget_bytes // (2 * HW * itemsize))
    tc = (cap // pack) * pack
    return int(max(pack, min(tc, C)))


def _spatial_attention_kernel(x_ref, w_ref, o_ref, max_ref, pad_ref,
                              *, W, HW, B, C, TC, ragged):
    # x_ref:   (TC, HW) native-dtype VMEM -- one channel tile, spatial dims flattened
    # w_ref:   (7, 7)   f32 SMEM          -- conv1 weight (scalar reads)
    # o_ref:   (1, HW)  x-dtype VMEM      -- attention map for this batch element
    # max_ref: (1, HW)  f32 VMEM scratch  -- running channel max
    # pad_ref: (1, L)   f32 VMEM scratch  -- zero-padded flat max map (interior at lane offset B)
    c = pl.program_id(1)
    nc = pl.num_programs(1)

    # ---- streaming channel max: native-dtype DMA, f32 VPU math (v5e-safe) ----
    xf = x_ref[...].astype(jnp.float32)                               # (TC, HW)
    if ragged:
        # Last channel tile may extend past C; mask garbage rows to -inf.
        rows = lax.broadcasted_iota(jnp.int32, (TC, HW), 0)
        limit = jnp.minimum(C - c * TC, TC)
        xf = jnp.where(rows < limit, xf, -jnp.inf)
    tile_max = jnp.max(xf, axis=0, keepdims=True)                     # (1, HW)

    @pl.when(c == 0)
    def _init():
        max_ref[...] = tile_max

    @pl.when(c > 0)
    def _update():
        max_ref[...] = jnp.maximum(max_ref[...], tile_max)

    # ---- last channel step: 7x7 "same" cross-correlation (no bias) + sigmoid ----
    @pl.when(c == nc - 1)
    def _finalize():
        L = pad_ref.shape[1]
        # Zero only the borders (row zero-padding); the interior is fully overwritten.
        pad_ref[:, 0:B] = jnp.zeros((1, B), jnp.float32)
        pad_ref[:, B + HW:L] = jnp.zeros((1, L - B - HW), jnp.float32)
        pad_ref[:, B:B + HW] = max_ref[...]                           # lane-aligned store

        pow2_w = (W & (W - 1)) == 0

        for s0 in range(0, HW, STRIP):                                # static strip loop
            S = min(STRIP, HW - s0)
            Sr = _round_up(S, 128)
            Lw = Sr + 2 * B
            # ONE lane-aligned load per strip; all 49 taps come from XLU rolls of this window.
            window = pad_ref[:, s0:s0 + Lw]                           # (1, Lw), f32

            # In-kernel column index (no mask input): col = (s0 + i) % W without vector mod.
            lane = lax.broadcasted_iota(jnp.int32, (1, S), 1) + s0
            if pow2_w:
                col = (lane & (W - 1)).astype(jnp.float32)
            else:
                fi = lane.astype(jnp.float32)
                col = fi - W * jnp.floor(fi / W)                      # exact for realistic H*W

            acc = jnp.zeros((1, S), jnp.float32)
            for dw in range(-PAD, PAD + 1):
                part = jnp.zeros((1, S), jnp.float32)
                for dh in range(-PAD, PAD + 1):
                    shift = dh * W + dw
                    amt = (-shift) % Lw                               # static, nonnegative
                    rolled = pltpu.roll(window, shift=amt, axis=1) if amt else window
                    # Lane-aligned in-register slice; no wrap (margin B >= 3W+3 on both sides).
                    part = part + w_ref[dh + PAD, dw + PAD] * rolled[:, B:B + S]
                cd = col + float(dw)
                # One column-validity select per dw zeros cross-row contamination.
                acc = acc + jnp.where((cd >= 0.0) & (cd < float(W)), part, 0.0)

            # sigmoid: exp on the EUP, exact reciprocal (keeps 1e-5 tolerance).
            y = pl.reciprocal(1.0 + jnp.exp(-acc))
            o_ref[:, s0:s0 + S] = y.astype(o_ref.dtype)


def spatial_attention(x, weight):
    """x: (N, C, H, W), weight: (K, K) -> (N, 1, H, W) in x.dtype."""
    N, C, H, W = x.shape
    HW = H * W
    x_flat = x.reshape(N, C, HW)                 # native dtype: no f32 upcast copy in HBM
    itemsize = x.dtype.itemsize
    pack = {1: 32, 2: 16, 4: 8}.get(itemsize, 8)  # sublane packing per dtype width

    # Channel tile: double-buffered input block budget = half of this chip's VMEM.
    vmem_cap = _vmem_capacity_bytes()
    input_budget = max(4 * 1024 * 1024, vmem_cap // 2)
    TC = _pick_channel_tile(C, HW, itemsize, pack, input_budget)
    nc = -(-C // TC)
    ragged = (C % TC) != 0

    # Flat zero-padded scratch geometry: interior at lane-aligned offset B, margin B on both
    # sides (B >= PAD*W + PAD), so every tap of every strip window stays in-bounds.
    B = _round_up(PAD * W + PAD, 128)
    L = 2 * B + _round_up(HW, 128)

    kernel = functools.partial(_spatial_attention_kernel,
                               W=W, HW=HW, B=B, C=C, TC=TC, ragged=ragged)

    # Explicit VMEM accounting (+ headroom) instead of a blanket capacity fraction.
    vmem_need = (2 * TC * HW * itemsize          # double-buffered x input blocks
                 + 2 * HW * itemsize             # double-buffered output block
                 + HW * 4 + L * 4                # max / padded-map scratch
                 + 8 * 1024)                     # weight + slack
    vmem_limit = int(min(vmem_cap, vmem_need + 16 * 1024 * 1024))

    cost = pl.CostEstimate(
        flops=int(N * HW * (C + 2 * K * K + 8)),
        transcendentals=int(N * HW),
        bytes_accessed=int(N * C * HW * itemsize + N * HW * itemsize + K * K * 4),
    )

    out_flat = pl.pallas_call(
        kernel,
        out_shape=jax.ShapeDtypeStruct((N, 1, HW), x.dtype),
        grid=(N, nc),
        in_specs=[
            pl.BlockSpec((None, TC, HW), lambda n, c: (n, c, 0)),
            pl.BlockSpec(memory_space=pltpu.MemorySpace.SMEM),
        ],
        out_specs=pl.BlockSpec((None, 1, HW), lambda n, c: (n, 0, 0)),
        scratch_shapes=[
            pltpu.VMEM((1, HW), jnp.float32),    # running channel max
            pltpu.VMEM((1, L), jnp.float32),     # zero-padded flat max map
        ],
        compiler_params=pltpu.CompilerParams(
            dimension_semantics=("parallel", "arbitrary"),
            vmem_limit_bytes=vmem_limit,
        ),
        cost_estimate=cost,
    )(x_flat, weight.astype(jnp.float32))

    return out_flat.reshape(N, 1, H, W)


def reference(x, weight):
    # Pure-JAX reference of the PyTorch forward pass.
    m = jnp.max(x.astype(jnp.float32), axis=1, keepdims=True)         # (N, 1, H, W)
    w = weight.astype(jnp.float32).reshape(1, 1, K, K)                 # OIHW
    y = lax.conv_general_dilated(
        m, w, window_strides=(1, 1),
        padding=((PAD, PAD), (PAD, PAD)),
        dimension_numbers=("NCHW", "OIHW", "NCHW"))
    return jax.nn.sigmoid(y)


if __name__ == "__main__":
    key = jax.random.PRNGKey(0)
    kx, kw = jax.random.split(key)

    # Small NCHW input consistent with the module's forward.
    x = jax.random.normal(kx, (2, 4, 16, 16), dtype=jnp.float32)

    # Deterministic conv weight init (Conv2d(1, 1, 7, bias=False) -> stored as (7, 7)).
    fan_in = 1 * K * K
    bound = 1.0 / math.sqrt(fan_in)
    weight = jax.random.uniform(kw, (K, K), minval=-bound, maxval=bound,
                                dtype=jnp.float32)

    out = spatial_attention(x, weight)
    out = jax.block_until_ready(out)

    ref = reference(x, weight)
    assert out.shape == (2, 1, 16, 16), out.shape
    assert out.dtype == x.dtype, out.dtype
    assert jnp.allclose(out, ref, atol=1e-5, rtol=1e-5), "mismatch vs JAX reference"

    print("KERNEL_OK")
</pallas_src>

<mosaic_0001>
module attributes {stable_mosaic.version = 11 : i64} {
  func.func @_spatial_attention_kernel(%arg0: i32, %arg1: i32, %arg2: memref<1x4x256xf32, #tpu.memory_space<vmem>>, %arg3: memref<7x7xf32, #tpu.memory_space<smem>>, %arg4: memref<1x1x256xf32, #tpu.memory_space<vmem>>, %arg5: memref<1x256xf32, #tpu.memory_space<vmem>>, %arg6: memref<1x512xf32, #tpu.memory_space<vmem>>) attributes {dimension_semantics = [#tpu.dimension_semantics<parallel>, #tpu.dimension_semantics<arbitrary>], iteration_bounds = array<i64: 2, 1>, scalar_prefetch = 0 : i64, scratch_operands = 2 : i64, tpu.core_type = #tpu.core_type<tc>, window_params = [{transform_indices = @transform_0, window_bounds = array<i64: 1, 4, 256>}, {transform_indices = @transform_1, window_bounds = array<i64: 7, 7>}, {transform_indices = @transform_2, window_bounds = array<i64: 1, 1, 256>}]} {
    %c0 = arith.constant 0 : index
    %c0_0 = arith.constant 0 : index
    %c0_1 = arith.constant 0 : index
    %0 = vector.load %arg2[%c0, %c0_0, %c0_1] : memref<1x4x256xf32, #tpu.memory_space<vmem>>, vector<1x4x256xf32>
    %1 = vector.shape_cast %0 : vector<1x4x256xf32> to vector<4x256xf32>
    %cst = arith.constant dense<0xFF800000> : vector<256xf32>
    %2 = vector.multi_reduction <maximumf>, %1, %cst [0] : vector<4x256xf32> to vector<256xf32>
    %3 = vector.shape_cast %2 : vector<256xf32> to vector<1x256xf32>
    %c0_i32 = arith.constant 0 : i32
    %4 = arith.cmpi eq, %arg1, %c0_i32 : i32
    %5 = arith.extui %4 : i1 to i32
    %c0_i32_2 = arith.constant 0 : i32
    %6 = arith.cmpi ne, %5, %c0_i32_2 : i32
    scf.if %6 {
      %c0_7 = arith.constant 0 : index
      %c0_8 = arith.constant 0 : index
      %13 = vector.load %arg5[%c0_7, %c0_8] : memref<1x256xf32, #tpu.memory_space<vmem>>, vector<1x256xf32>
      tpu.vector_store %arg5[%c0_7, %c0_8], %3 {strides = array<i32>} : memref<1x256xf32, #tpu.memory_space<vmem>>, vector<1x256xf32>,
    } else {
    }
    %c0_i32_3 = arith.constant 0 : i32
    %7 = arith.cmpi sgt, %arg1, %c0_i32_3 : i32
    %8 = arith.extui %7 : i1 to i32
    %c0_i32_4 = arith.constant 0 : i32
    %9 = arith.cmpi ne, %8, %c0_i32_4 : i32
    scf.if %9 {
      %c0_7 = arith.constant 0 : index
      %c0_8 = arith.constant 0 : index
      %13 = vector.load %arg5[%c0_7, %c0_8] : memref<1x256xf32, #tpu.memory_space<vmem>>, vector<1x256xf32>
      %14 = arith.maximumf %13, %3 : vector<1x256xf32>
      %c0_9 = arith.constant 0 : index
      %c0_10 = arith.constant 0 : index
      %15 = vector.load %arg5[%c0_9, %c0_10] : memref<1x256xf32, #tpu.memory_space<vmem>>, vector<1x256xf32>
      tpu.vector_store %arg5[%c0_9, %c0_10], %14 {strides = array<i32>} : memref<1x256xf32, #tpu.memory_space<vmem>>, vector<1x256xf32>,
    } else {
    }
    %c0_i32_5 = arith.constant 0 : i32
    %10 = arith.cmpi eq, %arg1, %c0_i32_5 : i32
    %11 = arith.extui %10 : i1 to i32
    %c0_i32_6 = arith.constant 0 : i32
    %12 = arith.cmpi ne, %11, %c0_i32_6 : i32
    scf.if %12 {
      %cst_7 = arith.constant 0.000000e+00 : f32
      %13 = vector.broadcast %cst_7 : f32 to vector<1x128xf32>
      %c0_8 = arith.constant 0 : index
      %c0_9 = arith.constant 0 : index
      %14 = vector.load %arg6[%c0_8, %c0_9] : memref<1x512xf32, #tpu.memory_space<vmem>>, vector<1x128xf32>
      tpu.vector_store %arg6[%c0_8, %c0_9], %13 {strides = array<i32>} : memref<1x512xf32, #tpu.memory_space<vmem>>, vector<1x128xf32>,
      %cst_10 = arith.constant 0.000000e+00 : f32
      %15 = vector.broadcast %cst_10 : f32 to vector<1x128xf32>
      %c0_11 = arith.constant 0 : index
      %c384 = arith.constant 384 : index
      %16 = vector.load %arg6[%c0_11, %c384] : memref<1x512xf32, #tpu.memory_space<vmem>>, vector<1x128xf32>
      tpu.vector_store %arg6[%c0_11, %c384], %15 {strides = array<i32>} : memref<1x512xf32, #tpu.memory_space<vmem>>, vector<1x128xf32>,
      %c0_12 = arith.constant 0 : index
      %c0_13 = arith.constant 0 : index
      %17 = vector.load %arg5[%c0_12, %c0_13] : memref<1x256xf32, #tpu.memory_space<vmem>>, vector<1x256xf32>
      %c0_14 = arith.constant 0 : index
      %c128 = arith.constant 128 : index
      %18 = vector.load %arg6[%c0_14, %c128] : memref<1x512xf32, #tpu.memory_space<vmem>>, vector<1x256xf32>
      tpu.vector_store %arg6[%c0_14, %c128], %17 {strides = array<i32>} : memref<1x512xf32, #tpu.memory_space<vmem>>, vector<1x256xf32>,
      %c0_15 = arith.constant 0 : index
      %c0_16 = arith.constant 0 : index
      %19 = vector.load %arg6[%c0_15, %c0_16] : memref<1x512xf32, #tpu.memory_space<vmem>>, vector<1x512xf32>
      %20 = tpu.iota {dimensions = array<i32: 1>} : vector<1x256xi32>
      %c0_i32_17 = arith.constant 0 : i32
      %21 = vector.broadcast %c0_i32_17 : i32 to vector<1x256xi32>
      %22 = arith.addi %20, %21 : vector<1x256xi32>
      %c15_i32 = arith.constant 15 : i32
      %23 = vector.broadcast %c15_i32 : i32 to vector<1x256xi32>
      %24 = arith.andi %22, %23 : vector<1x256xi32>
      %25 = arith.sitofp %24 : vector<1x256xi32> to vector<1x256xf32>
      %cst_18 = arith.constant 0.000000e+00 : f32
      %26 = vector.broadcast %cst_18 : f32 to vector<1x256xf32>
      %cst_19 = arith.constant 0.000000e+00 : f32
      %27 = vector.broadcast %cst_19 : f32 to vector<1x256xf32>
      %c51_i32 = arith.constant 51 : i32
      %28 = tpu.dynamic_rotate %19 by %c51_i32 dim 1 : vector<1x512xf32>, i32 -> vector<1x512xf32>
      %c0_20 = arith.constant 0 : index
      %c0_21 = arith.constant 0 : index
      %29 = memref.load %arg3[%c0_20, %c0_21] : memref<7x7xf32, #tpu.memory_space<smem>>
      %30 = vector.extract_strided_slice %28 {offsets = [0, 128], sizes = [1, 256], strides = [1, 1]} : vector<1x512xf32> to vector<1x256xf32>
      %31 = vector.broadcast %29 : f32 to vector<1x256xf32>
      %32 = arith.mulf %31, %30 : vector<1x256xf32>
      %33 = arith.addf %27, %32 : vector<1x256xf32>
      %c35_i32 = arith.constant 35 : i32
      %34 = tpu.dynamic_rotate %19 by %c35_i32 dim 1 : vector<1x512xf32>, i32 -> vector<1x512xf32>
      %c1 = arith.constant 1 : index
      %c0_22 = arith.constant 0 : index
      %35 = memref.load %arg3[%c1, %c0_22] : memref<7x7xf32, #tpu.memory_space<smem>>
      %36 = vector.extract_strided_slice %34 {offsets = [0, 128], sizes = [1, 256], strides = [1, 1]} : vector<1x512xf32> to vector<1x256xf32>
      %37 = vector.broadcast %35 : f32 to vector<1x256xf32>
      %38 = arith.mulf %37, %36 : vector<1x256xf32>
      %39 = arith.addf %33, %38 : vector<1x256xf32>
      %c19_i32 = arith.constant 19 : i32
      %40 = tpu.dynamic_rotate %19 by %c19_i32 dim 1 : vector<1x512xf32>, i32 -> vector<1x512xf32>
      %c2 = arith.constant 2 : index
      %c0_23 = arith.constant 0 : index
      %41 = memref.load %arg3[%c2, %c0_23] : memref<7x7xf32, #tpu.memory_space<smem>>
      %42 = vector.extract_strided_slice %40 {offsets = [0, 128], sizes = [1, 256], strides = [1, 1]} : vector<1x512xf32> to vector<1x256xf32>
      %43 = vector.broadcast %41 : f32 to vector<1x256xf32>
      %44 = arith.mulf %43, %42 : vector<1x256xf32>
      %45 = arith.addf %39, %44 : vector<1x256xf32>
      %c3_i32 = arith.constant 3 : i32
      %46 = tpu.dynamic_rotate %19 by %c3_i32 dim 1 : vector<1x512xf32>, i32 -> vector<1x512xf32>
      %c3 = arith.constant 3 : index
      %c0_24 = arith.constant 0 : index
      %47 = memref.load %arg3[%c3, %c0_24] : memref<7x7xf32, #tpu.memory_space<smem>>
      %48 = vector.extract_strided_slice %46 {offsets = [0, 128], sizes = [1, 256], strides = [1, 1]} : vector<1x512xf32> to vector<1x256xf32>
      %49 = vector.broadcast %47 : f32 to vector<1x256xf32>
      %50 = arith.mulf %49, %48 : vector<1x256xf32>
      %51 = arith.addf %45, %50 : vector<1x256xf32>
      %c499_i32 = arith.constant 499 : i32
      %52 = tpu.dynamic_rotate %19 by %c499_i32 dim 1 : vector<1x512xf32>, i32 -> vector<1x512xf32>
      %c4 = arith.constant 4 : index
      %c0_25 = arith.constant 0 : index
      %53 = memref.load %arg3[%c4, %c0_25] : memref<7x7xf32, #tpu.memory_space<smem>>
      %54 = vector.extract_strided_slice %52 {offsets = [0, 128], sizes = [1, 256], strides = [1, 1]} : vector<1x512xf32> to vector<1x256xf32>
      %55 = vector.broadcast %53 : f32 to vector<1x256xf32>
      %56 = arith.mulf %55, %54 : vector<1x256xf32>
      %57 = arith.addf %51, %56 : vector<1x256xf32>
      %c483_i32 = arith.constant 483 : i32
      %58 = tpu.dynamic_rotate %19 by %c483_i32 dim 1 : vector<1x512xf32>, i32 -> vector<1x512xf32>
      %c5 = arith.constant 5 : index
      %c0_26 = arith.constant 0 : index
      %59 = memref.load %arg3[%c5, %c0_26] : memref<7x7xf32, #tpu.memory_space<smem>>
      %60 = vector.extract_strided_slice %58 {offsets = [0, 128], sizes = [1, 256], strides = [1, 1]} : vector<1x512xf32> to vector<1x256xf32>
      %61 = vector.broadcast %59 : f32 to vector<1x256xf32>
      %62 = arith.mulf %61, %60 : vector<1x256xf32>
      %63 = arith.addf %57, %62 : vector<1x256xf32>
      %c467_i32 = arith.constant 467 : i32
      %64 = tpu.dynamic_rotate %19 by %c467_i32 dim 1 : vector<1x512xf32>, i32 -> vector<1x512xf32>
      %c6 = arith.constant 6 : index
      %c0_27 = arith.constant 0 : index
      %65 = memref.load %arg3[%c6, %c0_27] : memref<7x7xf32, #tpu.memory_space<smem>>
      %66 = vector.extract_strided_slice %64 {offsets = [0, 128], sizes = [1, 256], strides = [1, 1]} : vector<1x512xf32> to vector<1x256xf32>
      %67 = vector.broadcast %65 : f32 to vector<1x256xf32>
      %68 = arith.mulf %67, %66 : vector<1x256xf32>
      %69 = arith.addf %63, %68 : vector<1x256xf32>
      %cst_28 = arith.constant -3.000000e+00 : f32
      %70 = vector.broadcast %cst_28 : f32 to vector<1x256xf32>
      %71 = arith.addf %25, %70 : vector<1x256xf32>
      %cst_29 = arith.constant 0.000000e+00 : f32
      %72 = vector.broadcast %cst_29 : f32 to vector<1x256xf32>
      %73 = arith.cmpf oge, %71, %72 : vector<1x256xf32>
      %cst_30 = arith.constant 1.600000e+01 : f32
      %74 = vector.broadcast %cst_30 : f32 to vector<1x256xf32>
      %75 = arith.cmpf olt, %71, %74 : vector<1x256xf32>
      %76 = arith.andi %73, %75 : vector<1x256xi1>
      %cst_31 = arith.constant 0.000000e+00 : f32
      %77 = vector.broadcast %cst_31 : f32 to vector<1x256xf32>
      %78 = arith.select %76, %69, %77 : vector<1x256xi1>, vector<1x256xf32>
      %79 = arith.addf %26, %78 : vector<1x256xf32>
      %cst_32 = arith.constant 0.000000e+00 : f32
      %80 = vector.broadcast %cst_32 : f32 to vector<1x256xf32>
      %c50_i32 = arith.constant 50 : i32
      %81 = tpu.dynamic_rotate %19 by %c50_i32 dim 1 : vector<1x512xf32>, i32 -> vector<1x512xf32>
      %c0_33 = arith.constant 0 : index
      %c1_34 = arith.constant 1 : index
      %82 = memref.load %arg3[%c0_33, %c1_34] : memref<7x7xf32, #tpu.memory_space<smem>>
      %83 = vector.extract_strided_slice %81 {offsets = [0, 128], sizes = [1, 256], strides = [1, 1]} : vector<1x512xf32> to vector<1x256xf32>
      %84 = vector.broadcast %82 : f32 to vector<1x256xf32>
      %85 = arith.mulf %84, %83 : vector<1x256xf32>
      %86 = arith.addf %80, %85 : vector<1x256xf32>
      %c34_i32 = arith.constant 34 : i32
      %87 = tpu.dynamic_rotate %19 by %c34_i32 dim 1 : vector<1x512xf32>, i32 -> vector<1x512xf32>
      %c1_35 = arith.constant 1 : index
      %c1_36 = arith.constant 1 : index
      %88 = memref.load %arg3[%c1_35, %c1_36] : memref<7x7xf32, #tpu.memory_space<smem>>
      %89 = vector.extract_strided_slice %87 {offsets = [0, 128], sizes = [1, 256], strides = [1, 1]} : vector<1x512xf32> to vector<1x256xf32>
      %90 = vector.broadcast %88 : f32 to vector<1x256xf32>
      %91 = arith.mulf %90, %89 : vector<1x256xf32>
      %92 = arith.addf %86, %91 : vector<1x256xf32>
      %c18_i32 = arith.constant 18 : i32
      %93 = tpu.dynamic_rotate %19 by %c18_i32 dim 1 : vector<1x512xf32>, i32 -> vector<1x512xf32>
      %c2_37 = arith.constant 2 : index
      %c1_38 = arith.constant 1 : index
      %94 = memref.load %arg3[%c2_37, %c1_38] : memref<7x7xf32, #tpu.memory_space<smem>>
      %95 = vector.extract_strided_slice %93 {offsets = [0, 128], sizes = [1, 256], strides = [1, 1]} : vector<1x512xf32> to vector<1x256xf32>
      %96 = vector.broadcast %94 : f32 to vector<1x256xf32>
      %97 = arith.mulf %96, %95 : vector<1x256xf32>
      %98 = arith.addf %92, %97 : vector<1x256xf32>
      %c2_i32 = arith.constant 2 : i32
      %99 = tpu.dynamic_rotate %19 by %c2_i32 dim 1 : vector<1x512xf32>, i32 -> vector<1x512xf32>
      %c3_39 = arith.constant 3 : index
      %c1_40 = arith.constant 1 : index
      %100 = memref.load %arg3[%c3_39, %c1_40] : memref<7x7xf32, #tpu.memory_space<smem>>
      %101 = vector.extract_strided_slice %99 {offsets = [0, 128], sizes = [1, 256], strides = [1, 1]} : vector<1x512xf32> to vector<1x256xf32>
      %102 = vector.broadcast %100 : f32 to vector<1x256xf32>
      %103 = arith.mulf %102, %101 : vector<1x256xf32>
      %104 = arith.addf %98, %103 : vector<1x256xf32>
      %c498_i32 = arith.constant 498 : i32
      %105 = tpu.dynamic_rotate %19 by %c498_i32 dim 1 : vector<1x512xf32>, i32 -> vector<1x512xf32>
      %c4_41 = arith.constant 4 : index
      %c1_42 = arith.constant 1 : index
      %106 = memref.load %arg3[%c4_41, %c1_42] : memref<7x7xf32, #tpu.memory_space<smem>>
      %107 = vector.extract_strided_slice %105 {offsets = [0, 128], sizes = [1, 256], strides = [1, 1]} : vector<1x512xf32> to vector<1x256xf32>
      %108 = vector.broadcast %106 : f32 to vector<1x256xf32>
      %109 = arith.mulf %108, %107 : vector<1x256xf32>
      %110 = arith.addf %104, %109 : vector<1x256xf32>
      %c482_i32 = arith.constant 482 : i32
      %111 = tpu.dynamic_rotate %19 by %c482_i32 dim 1 : vector<1x512xf32>, i32 -> vector<1x512xf32>
      %c5_43 = arith.constant 5 : index
      %c1_44 = arith.constant 1 : index
      %112 = memref.load %arg3[%c5_43, %c1_44] : memref<7x7xf32, #tpu.memory_space<smem>>
      %113 = vector.extract_strided_slice %111 {offsets = [0, 128], sizes = [1, 256], strides = [1, 1]} : vector<1x512xf32> to vector<1x256xf32>
      %114 = vector.broadcast %112 : f32 to vector<1x256xf32>
      %115 = arith.mulf %114, %113 : vector<1x256xf32>
      %116 = arith.addf %110, %115 : vector<1x256xf32>
      %c466_i32 = arith.constant 466 : i32
      %117 = tpu.dynamic_rotate %19 by %c466_i32 dim 1 : vector<1x512xf32>, i32 -> vector<1x512xf32>
      %c6_45 = arith.constant 6 : index
      %c1_46 = arith.constant 1 : index
      %118 = memref.load %arg3[%c6_45, %c1_46] : memref<7x7xf32, #tpu.memory_space<smem>>
      %119 = vector.extract_strided_slice %117 {offsets = [0, 128], sizes = [1, 256], strides = [1, 1]} : vector<1x512xf32> to vector<1x256xf32>
      %120 = vector.broadcast %118 : f32 to vector<1x256xf32>
      %121 = arith.mulf %120, %119 : vector<1x256xf32>
      %122 = arith.addf %116, %121 : vector<1x256xf32>
      %cst_47 = arith.constant -2.000000e+00 : f32
      %123 = vector.broadcast %cst_47 : f32 to vector<1x256xf32>
      %124 = arith.addf %25, %123 : vector<1x256xf32>
      %cst_48 = arith.constant 0.000000e+00 : f32
      %125 = vector.broadcast %cst_48 : f32 to vector<1x256xf32>
      %126 = arith.cmpf oge, %124, %125 : vector<1x256xf32>
      %cst_49 = arith.constant 1.600000e+01 : f32
      %127 = vector.broadcast %cst_49 : f32 to vector<1x256xf32>
      %128 = arith.cmpf olt, %124, %127 : vector<1x256xf32>
      %129 = arith.andi %126, %128 : vector<1x256xi1>
      %cst_50 = arith.constant 0.000000e+00 : f32
      %130 = vector.broadcast %cst_50 : f32 to vector<1x256xf32>
      %131 = arith.select %129, %122, %130 : vector<1x256xi1>, vector<1x256xf32>
      %132 = arith.addf %79, %131 : vector<1x256xf32>
      %cst_51 = arith.constant 0.000000e+00 : f32
      %133 = vector.broadcast %cst_51 : f32 to vector<1x256xf32>
      %c49_i32 = arith.constant 49 : i32
      %134 = tpu.dynamic_rotate %19 by %c49_i32 dim 1 : vector<1x512xf32>, i32 -> vector<1x512xf32>
      %c0_52 = arith.constant 0 : index
      %c2_53 = arith.constant 2 : index
      %135 = memref.load %arg3[%c0_52, %c2_53] : memref<7x7xf32, #tpu.memory_space<smem>>
      %136 = vector.extract_strided_slice %134 {offsets = [0, 128], sizes = [1, 256], strides = [1, 1]} : vector<1x512xf32> to vector<1x256xf32>
      %137 = vector.broadcast %135 : f32 to vector<1x256xf32>
      %138 = arith.mulf %137, %136 : vector<1x256xf32>
      %139 = arith.addf %133, %138 : vector<1x256xf32>
      %c33_i32 = arith.constant 33 : i32
      %140 = tpu.dynamic_rotate %19 by %c33_i32 dim 1 : vector<1x512xf32>, i32 -> vector<1x512xf32>
      %c1_54 = arith.constant 1 : index
      %c2_55 = arith.constant 2 : index
      %141 = memref.load %arg3[%c1_54, %c2_55] : memref<7x7xf32, #tpu.memory_space<smem>>
      %142 = vector.extract_strided_slice %140 {offsets = [0, 128], sizes = [1, 256], strides = [1, 1]} : vector<1x512xf32> to vector<1x256xf32>
      %143 = vector.broadcast %141 : f32 to vector<1x256xf32>
      %144 = arith.mulf %143, %142 : vector<1x256xf32>
      %145 = arith.addf %139, %144 : vector<1x256xf32>
      %c17_i32 = arith.constant 17 : i32
      %146 = tpu.dynamic_rotate %19 by %c17_i32 dim 1 : vector<1x512xf32>, i32 -> vector<1x512xf32>
      %c2_56 = arith.constant 2 : index
      %c2_57 = arith.constant 2 : index
      %147 = memref.load %arg3[%c2_56, %c2_57] : memref<7x7xf32, #tpu.memory_space<smem>>
      %148 = vector.extract_strided_slice %146 {offsets = [0, 128], sizes = [1, 256], strides = [1, 1]} : vector<1x512xf32> to vector<1x256xf32>
      %149 = vector.broadcast %147 : f32 to vector<1x256xf32>
      %150 = arith.mulf %149, %148 : vector<1x256xf32>
      %151 = arith.addf %145, %150 : vector<1x256xf32>
      %c1_i32 = arith.constant 1 : i32
      %152 = tpu.dynamic_rotate %19 by %c1_i32 dim 1 : vector<1x512xf32>, i32 -> vector<1x512xf32>
      %c3_58 = arith.constant 3 : index
      %c2_59 = arith.constant 2 : index
      %153 = memref.load %arg3[%c3_58, %c2_59] : memref<7x7xf32, #tpu.memory_space<smem>>
      %154 = vector.extract_strided_slice %152 {offsets = [0, 128], sizes = [1, 256], strides = [1, 1]} : vector<1x512xf32> to vector<1x256xf32>
      %155 = vector.broadcast %153 : f32 to vector<1x256xf32>
      %156 = arith.mulf %155, %154 : vector<1x256xf32>
      %157 = arith.addf %151, %156 : vector<1x256xf32>
      %c497_i32 = arith.constant 497 : i32
      %158 = tpu.dynamic_rotate %19 by %c497_i32 dim 1 : vector<1x512xf32>, i32 -> vector<1x512xf32>
      %c4_60 = arith.constant 4 : index
      %c2_61 = arith.constant 2 : index
      %159 = memref.load %arg3[%c4_60, %c2_61] : memref<7x7xf32, #tpu.memory_space<smem>>
      %160 = vector.extract_strided_slice %158 {offsets = [0, 128], sizes = [1, 256], strides = [1, 1]} : vector<1x512xf32> to vector<1x256xf32>
      %161 = vector.broadcast %159 : f32 to vector<1x256xf32>
      %162 = arith.mulf %161, %160 : vector<1x256xf32>
      %163 = arith.addf %157, %162 : vector<1x256xf32>
      %c481_i32 = arith.constant 481 : i32
      %164 = tpu.dynamic_rotate %19 by %c481_i32 dim 1 : vector<1x512xf32>, i32 -> vector<1x512xf32>
      %c5_62 = arith.constant 5 : index
      %c2_63 = arith.constant 2 : index
      %165 = memref.load %arg3[%c5_62, %c2_63] : memref<7x7xf32, #tpu.memory_space<smem>>
      %166 = vector.extract_strided_slice %164 {offsets = [0, 128], sizes = [1, 256], strides = [1, 1]} : vector<1x512xf32> to vector<1x256xf32>
      %167 = vector.broadcast %165 : f32 to vector<1x256xf32>
      %168 = arith.mulf %167, %166 : vector<1x256xf32>
      %169 = arith.addf %163, %168 : vector<1x256xf32>
      %c465_i32 = arith.constant 465 : i32
      %170 = tpu.dynamic_rotate %19 by %c465_i32 dim 1 : vector<1x512xf32>, i32 -> vector<1x512xf32>
      %c6_64 = arith.constant 6 : index
      %c2_65 = arith.constant 2 : index
      %171 = memref.load %arg3[%c6_64, %c2_65] : memref<7x7xf32, #tpu.memory_space<smem>>
      %172 = vector.extract_strided_slice %170 {offsets = [0, 128], sizes = [1, 256], strides = [1, 1]} : vector<1x512xf32> to vector<1x256xf32>
      %173 = vector.broadcast %171 : f32 to vector<1x256xf32>
      %174 = arith.mulf %173, %172 : vector<1x256xf32>
      %175 = arith.addf %169, %174 : vector<1x256xf32>
      %cst_66 = arith.constant -1.000000e+00 : f32
      %176 = vector.broadcast %cst_66 : f32 to vector<1x256xf32>
      %177 = arith.addf %25, %176 : vector<1x256xf32>
      %cst_67 = arith.constant 0.000000e+00 : f32
      %178 = vector.broadcast %cst_67 : f32 to vector<1x256xf32>
      %179 = arith.cmpf oge, %177, %178 : vector<1x256xf32>
      %cst_68 = arith.constant 1.600000e+01 : f32
      %180 = vector.broadcast %cst_68 : f32 to vector<1x256xf32>
      %181 = arith.cmpf olt, %177, %180 : vector<1x256xf32>
      %182 = arith.andi %179, %181 : vector<1x256xi1>
      %cst_69 = arith.constant 0.000000e+00 : f32
      %183 = vector.broadcast %cst_69 : f32 to vector<1x256xf32>
      %184 = arith.select %182, %175, %183 : vector<1x256xi1>, vector<1x256xf32>
      %185 = arith.addf %132, %184 : vector<1x256xf32>
      %cst_70 = arith.constant 0.000000e+00 : f32
      %186 = vector.broadcast %cst_70 : f32 to vector<1x256xf32>
      %c48_i32 = arith.constant 48 : i32
      %187 = tpu.dynamic_rotate %19 by %c48_i32 dim 1 : vector<1x512xf32>, i32 -> vector<1x512xf32>
      %c0_71 = arith.constant 0 : index
      %c3_72 = arith.constant 3 : index
      %188 = memref.load %arg3[%c0_71, %c3_72] : memref<7x7xf32, #tpu.memory_space<smem>>
      %189 = vector.extract_strided_slice %187 {offsets = [0, 128], sizes = [1, 256], strides = [1, 1]} : vector<1x512xf32> to vector<1x256xf32>
      %190 = vector.broadcast %188 : f32 to vector<1x256xf32>
      %191 = arith.mulf %190, %189 : vector<1x256xf32>
      %192 = arith.addf %186, %191 : vector<1x256xf32>
      %c32_i32 = arith.constant 32 : i32
      %193 = tpu.dynamic_rotate %19 by %c32_i32 dim 1 : vector<1x512xf32>, i32 -> vector<1x512xf32>
      %c1_73 = arith.constant 1 : index
      %c3_74 = arith.constant 3 : index
      %194 = memref.load %arg3[%c1_73, %c3_74] : memref<7x7xf32, #tpu.memory_space<smem>>
      %195 = vector.extract_strided_slice %193 {offsets = [0, 128], sizes = [1, 256], strides = [1, 1]} : vector<1x512xf32> to vector<1x256xf32>
      %196 = vector.broadcast %194 : f32 to vector<1x256xf32>
      %197 = arith.mulf %196, %195 : vector<1x256xf32>
      %198 = arith.addf %192, %197 : vector<1x256xf32>
      %c16_i32 = arith.constant 16 : i32
      %199 = tpu.dynamic_rotate %19 by %c16_i32 dim 1 : vector<1x512xf32>, i32 -> vector<1x512xf32>
      %c2_75 = arith.constant 2 : index
      %c3_76 = arith.constant 3 : index
      %200 = memref.load %arg3[%c2_75, %c3_76] : memref<7x7xf32, #tpu.memory_space<smem>>
      %201 = vector.extract_strided_slice %199 {offsets = [0, 128], sizes = [1, 256], strides = [1, 1]} : vector<1x512xf32> to vector<1x256xf32>
      %202 = vector.broadcast %200 : f32 to vector<1x256xf32>
      %203 = arith.mulf %202, %201 : vector<1x256xf32>
      %204 = arith.addf %198, %203 : vector<1x256xf32>
      %c3_77 = arith.constant 3 : index
      %c3_78 = arith.constant 3 : index
      %205 = memref.load %arg3[%c3_77, %c3_78] : memref<7x7xf32, #tpu.memory_space<smem>>
      %206 = vector.extract_strided_slice %19 {offsets = [0, 128], sizes = [1, 256], strides = [1, 1]} : vector<1x512xf32> to vector<1x256xf32>
      %207 = vector.broadcast %205 : f32 to vector<1x256xf32>
      %208 = arith.mulf %207, %206 : vector<1x256xf32>
      %209 = arith.addf %204, %208 : vector<1x256xf32>
      %c496_i32 = arith.constant 496 : i32
      %210 = tpu.dynamic_rotate %19 by %c496_i32 dim 1 : vector<1x512xf32>, i32 -> vector<1x512xf32>
      %c4_79 = arith.constant 4 : index
      %c3_80 = arith.constant 3 : index
      %211 = memref.load %arg3[%c4_79, %c3_80] : memref<7x7xf32, #tpu.memory_space<smem>>
      %212 = vector.extract_strided_slice %210 {offsets = [0, 128], sizes = [1, 256], strides = [1, 1]} : vector<1x512xf32> to vector<1x256xf32>
      %213 = vector.broadcast %211 : f32 to vector<1x256xf32>
      %214 = arith.mulf %213, %212 : vector<1x256xf32>
      %215 = arith.addf %209, %214 : vector<1x256xf32>
      %c480_i32 = arith.constant 480 : i32
      %216 = tpu.dynamic_rotate %19 by %c480_i32 dim 1 : vector<1x512xf32>, i32 -> vector<1x512xf32>
      %c5_81 = arith.constant 5 : index
      %c3_82 = arith.constant 3 : index
      %217 = memref.load %arg3[%c5_81, %c3_82] : memref<7x7xf32, #tpu.memory_space<smem>>
      %218 = vector.extract_strided_slice %216 {offsets = [0, 128], sizes = [1, 256], strides = [1, 1]} : vector<1x512xf32> to vector<1x256xf32>
      %219 = vector.broadcast %217 : f32 to vector<1x256xf32>
      %220 = arith.mulf %219, %218 : vector<1x256xf32>
      %221 = arith.addf %215, %220 : vector<1x256xf32>
      %c464_i32 = arith.constant 464 : i32
      %222 = tpu.dynamic_rotate %19 by %c464_i32 dim 1 : vector<1x512xf32>, i32 -> vector<1x512xf32>
      %c6_83 = arith.constant 6 : index
      %c3_84 = arith.constant 3 : index
      %223 = memref.load %arg3[%c6_83, %c3_84] : memref<7x7xf32, #tpu.memory_space<smem>>
      %224 = vector.extract_strided_slice %222 {offsets = [0, 128], sizes = [1, 256], strides = [1, 1]} : vector<1x512xf32> to vector<1x256xf32>
      %225 = vector.broadcast %223 : f32 to vector<1x256xf32>
      %226 = arith.mulf %225, %224 : vector<1x256xf32>
      %227 = arith.addf %221, %226 : vector<1x256xf32>
      %cst_85 = arith.constant 0.000000e+00 : f32
      %228 = vector.broadcast %cst_85 : f32 to vector<1x256xf32>
      %229 = arith.addf %25, %228 : vector<1x256xf32>
      %cst_86 = arith.constant 0.000000e+00 : f32
      %230 = vector.broadcast %cst_86 : f32 to vector<1x256xf32>
      %231 = arith.cmpf oge, %229, %230 : vector<1x256xf32>
      %cst_87 = arith.constant 1.600000e+01 : f32
      %232 = vector.broadcast %cst_87 : f32 to vector<1x256xf32>
      %233 = arith.cmpf olt, %229, %232 : vector<1x256xf32>
      %234 = arith.andi %231, %233 : vector<1x256xi1>
      %cst_88 = arith.constant 0.000000e+00 : f32
      %235 = vector.broadcast %cst_88 : f32 to vector<1x256xf32>
      %236 = arith.select %234, %227, %235 : vector<1x256xi1>, vector<1x256xf32>
      %237 = arith.addf %185, %236 : vector<1x256xf32>
      %cst_89 = arith.constant 0.000000e+00 : f32
      %238 = vector.broadcast %cst_89 : f32 to vector<1x256xf32>
      %c47_i32 = arith.constant 47 : i32
      %239 = tpu.dynamic_rotate %19 by %c47_i32 dim 1 : vector<1x512xf32>, i32 -> vector<1x512xf32>
      %c0_90 = arith.constant 0 : index
      %c4_91 = arith.constant 4 : index
      %240 = memref.load %arg3[%c0_90, %c4_91] : memref<7x7xf32, #tpu.memory_space<smem>>
      %241 = vector.extract_strided_slice %239 {offsets = [0, 128], sizes = [1, 256], strides = [1, 1]} : vector<1x512xf32> to vector<1x256xf32>
      %242 = vector.broadcast %240 : f32 to vector<1x256xf32>
      %243 = arith.mulf %242, %241 : vector<1x256xf32>
      %244 = arith.addf %238, %243 : vector<1x256xf32>
      %c31_i32 = arith.constant 31 : i32
      %245 = tpu.dynamic_rotate %19 by %c31_i32 dim 1 : vector<1x512xf32>, i32 -> vector<1x512xf32>
      %c1_92 = arith.constant 1 : index
      %c4_93 = arith.constant 4 : index
      %246 = memref.load %arg3[%c1_92, %c4_93] : memref<7x7xf32, #tpu.memory_space<smem>>
      %247 = vector.extract_strided_slice %245 {offsets = [0, 128], sizes = [1, 256], strides = [1, 1]} : vector<1x512xf32> to vector<1x256xf32>
      %248 = vector.broadcast %246 : f32 to vector<1x256xf32>
      %249 = arith.mulf %248, %247 : vector<1x256xf32>
      %250 = arith.addf %244, %249 : vector<1x256xf32>
      %c15_i32_94 = arith.constant 15 : i32
      %251 = tpu.dynamic_rotate %19 by %c15_i32_94 dim 1 : vector<1x512xf32>, i32 -> vector<1x512xf32>
      %c2_95 = arith.constant 2 : index
      %c4_96 = arith.constant 4 : index
      %252 = memref.load %arg3[%c2_95, %c4_96] : memref<7x7xf32, #tpu.memory_space<smem>>
      %253 = vector.extract_strided_slice %251 {offsets = [0, 128], sizes = [1, 256], strides = [1, 1]} : vector<1x512xf32> to vector<1x256xf32>
      %254 = vector.broadcast %252 : f32 to vector<1x256xf32>
      %255 = arith.mulf %254, %253 : vector<1x256xf32>
      %256 = arith.addf %250, %255 : vector<1x256xf32>
      %c511_i32 = arith.constant 511 : i32
      %257 = tpu.dynamic_rotate %19 by %c511_i32 dim 1 : vector<1x512xf32>, i32 -> vector<1x512xf32>
      %c3_97 = arith.constant 3 : index
      %c4_98 = arith.constant 4 : index
      %258 = memref.load %arg3[%c3_97, %c4_98] : memref<7x7xf32, #tpu.memory_space<smem>>
      %259 = vector.extract_strided_slice %257 {offsets = [0, 128], sizes = [1, 256], strides = [1, 1]} : vector<1x512xf32> to vector<1x256xf32>
      %260 = vector.broadcast %258 : f32 to vector<1x256xf32>
      %261 = arith.mulf %260, %259 : vector<1x256xf32>
      %262 = arith.addf %256, %261 : vector<1x256xf32>
      %c495_i32 = arith.constant 495 : i32
      %263 = tpu.dynamic_rotate %19 by %c495_i32 dim 1 : vector<1x512xf32>, i32 -> vector<1x512xf32>
      %c4_99 = arith.constant 4 : index
      %c4_100 = arith.constant 4 : index
      %264 = memref.load %arg3[%c4_99, %c4_100] : memref<7x7xf32, #tpu.memory_space<smem>>
      %265 = vector.extract_strided_slice %263 {offsets = [0, 128], sizes = [1, 256], strides = [1, 1]} : vector<1x512xf32> to vector<1x256xf32>
      %266 = vector.broadcast %264 : f32 to vector<1x256xf32>
      %267 = arith.mulf %266, %265 : vector<1x256xf32>
      %268 = arith.addf %262, %267 : vector<1x256xf32>
      %c479_i32 = arith.constant 479 : i32
      %269 = tpu.dynamic_rotate %19 by %c479_i32 dim 1 : vector<1x512xf32>, i32 -> vector<1x512xf32>
      %c5_101 = arith.constant 5 : index
      %c4_102 = arith.constant 4 : index
      %270 = memref.load %arg3[%c5_101, %c4_102] : memref<7x7xf32, #tpu.memory_space<smem>>
      %271 = vector.extract_strided_slice %269 {offsets = [0, 128], sizes = [1, 256], strides = [1, 1]} : vector<1x512xf32> to vector<1x256xf32>
      %272 = vector.broadcast %270 : f32 to vector<1x256xf32>
      %273 = arith.mulf %272, %271 : vector<1x256xf32>
      %274 = arith.addf %268, %273 : vector<1x256xf32>
      %c463_i32 = arith.constant 463 : i32
      %275 = tpu.dynamic_rotate %19 by %c463_i32 dim 1 : vector<1x512xf32>, i32 -> vector<1x512xf32>
      %c6_103 = arith.constant 6 : index
      %c4_104 = arith.constant 4 : index
      %276 = memref.load %arg3[%c6_103, %c4_104] : memref<7x7xf32, #tpu.memory_space<smem>>
      %277 = vector.extract_strided_slice %275 {offsets = [0, 128], sizes = [1, 256], strides = [1, 1]} : vector<1x512xf32> to vector<1x256xf32>
      %278 = vector.broadcast %276 : f32 to vector<1x256xf32>
      %279 = arith.mulf %278, %277 : vector<1x256xf32>
      %280 = arith.addf %274, %279 : vector<1x256xf32>
      %cst_105 = arith.constant 1.000000e+00 : f32
      %281 = vector.broadcast %cst_105 : f32 to vector<1x256xf32>
      %282 = arith.addf %25, %281 : vector<1x256xf32>
      %cst_106 = arith.constant 0.000000e+00 : f32
      %283 = vector.broadcast %cst_106 : f32 to vector<1x256xf32>
      %284 = arith.cmpf oge, %282, %283 : vector<1x256xf32>
      %cst_107 = arith.constant 1.600000e+01 : f32
      %285 = vector.broadcast %cst_107 : f32 to vector<1x256xf32>
      %286 = arith.cmpf olt, %282, %285 : vector<1x256xf32>
      %287 = arith.andi %284, %286 : vector<1x256xi1>
      %cst_108 = arith.constant 0.000000e+00 : f32
      %288 = vector.broadcast %cst_108 : f32 to vector<1x256xf32>
      %289 = arith.select %287, %280, %288 : vector<1x256xi1>, vector<1x256xf32>
      %290 = arith.addf %237, %289 : vector<1x256xf32>
      %cst_109 = arith.constant 0.000000e+00 : f32
      %291 = vector.broadcast %cst_109 : f32 to vector<1x256xf32>
      %c46_i32 = arith.constant 46 : i32
      %292 = tpu.dynamic_rotate %19 by %c46_i32 dim 1 : vector<1x512xf32>, i32 -> vector<1x512xf32>
      %c0_110 = arith.constant 0 : index
      %c5_111 = arith.constant 5 : index
      %293 = memref.load %arg3[%c0_110, %c5_111] : memref<7x7xf32, #tpu.memory_space<smem>>
      %294 = vector.extract_strided_slice %292 {offsets = [0, 128], sizes = [1, 256], strides = [1, 1]} : vector<1x512xf32> to vector<1x256xf32>
      %295 = vector.broadcast %293 : f32 to vector<1x256xf32>
      %296 = arith.mulf %295, %294 : vector<1x256xf32>
      %297 = arith.addf %291, %296 : vector<1x256xf32>
      %c30_i32 = arith.constant 30 : i32
      %298 = tpu.dynamic_rotate %19 by %c30_i32 dim 1 : vector<1x512xf32>, i32 -> vector<1x512xf32>
      %c1_112 = arith.constant 1 : index
      %c5_113 = arith.constant 5 : index
      %299 = memref.load %arg3[%c1_112, %c5_113] : memref<7x7xf32, #tpu.memory_space<smem>>
      %300 = vector.extract_strided_slice %298 {offsets = [0, 128], sizes = [1, 256], strides = [1, 1]} : vector<1x512xf32> to vector<1x256xf32>
      %301 = vector.broadcast %299 : f32 to vector<1x256xf32>
      %302 = arith.mulf %301, %300 : vector<1x256xf32>
      %303 = arith.addf %297, %302 : vector<1x256xf32>
      %c14_i32 = arith.constant 14 : i32
      %304 = tpu.dynamic_rotate %19 by %c14_i32 dim 1 : vector<1x512xf32>, i32 -> vector<1x512xf32>
      %c2_114 = arith.constant 2 : index
      %c5_115 = arith.constant 5 : index
      %305 = memref.load %arg3[%c2_114, %c5_115] : memref<7x7xf32, #tpu.memory_space<smem>>
      %306 = vector.extract_strided_slice %304 {offsets = [0, 128], sizes = [1, 256], strides = [1, 1]} : vector<1x512xf32> to vector<1x256xf32>
      %307 = vector.broadcast %305 : f32 to vector<1x256xf32>
      %308 = arith.mulf %307, %306 : vector<1x256xf32>
      %309 = arith.addf %303, %308 : vector<1x256xf32>
      %c510_i32 = arith.constant 510 : i32
      %310 = tpu.dynamic_rotate %19 by %c510_i32 dim 1 : vector<1x512xf32>, i32 -> vector<1x512xf32>
      %c3_116 = arith.constant 3 : index
      %c5_117 = arith.constant 5 : index
      %311 = memref.load %arg3[%c3_116, %c5_117] : memref<7x7xf32, #tpu.memory_space<smem>>
      %312 = vector.extract_strided_slice %310 {offsets = [0, 128], sizes = [1, 256], strides = [1, 1]} : vector<1x512xf32> to vector<1x256xf32>
      %313 = vector.broadcast %311 : f32 to vector<1x256xf32>
      %314 = arith.mulf %313, %312 : vector<1x256xf32>
      %315 = arith.addf %309, %314 : vector<1x256xf32>
      %c494_i32 = arith.constant 494 : i32
      %316 = tpu.dynamic_rotate %19 by %c494_i32 dim 1 : vector<1x512xf32>, i32 -> vector<1x512xf32>
      %c4_118 = arith.constant 4 : index
      %c5_119 = arith.constant 5 : index
      %317 = memref.load %arg3[%c4_118, %c5_119] : memref<7x7xf32, #tpu.memory_space<smem>>
      %318 = vector.extract_strided_slice %316 {offsets = [0, 128], sizes = [1, 256], strides = [1, 1]} : vector<1x512xf32> to vector<1x256xf32>
      %319 = vector.broadcast %317 : f32 to vector<1x256xf32>
      %320 = arith.mulf %319, %318 : vector<1x256xf32>
      %321 = arith.addf %315, %320 : vector<1x256xf32>
      %c478_i32 = arith.constant 478 : i32
      %322 = tpu.dynamic_rotate %19 by %c478_i32 dim 1 : vector<1x512xf32>, i32 -> vector<1x512xf32>
      %c5_120 = arith.constant 5 : index
      %c5_121 = arith.constant 5 : index
      %323 = memref.load %arg3[%c5_120, %c5_121] : memref<7x7xf32, #tpu.memory_space<smem>>
      %324 = vector.extract_strided_slice %322 {offsets = [0, 128], sizes = [1, 256], strides = [1, 1]} : vector<1x512xf32> to vector<1x256xf32>
      %325 = vector.broadcast %323 : f32 to vector<1x256xf32>
      %326 = arith.mulf %325, %324 : vector<1x256xf32>
      %327 = arith.addf %321, %326 : vector<1x256xf32>
      %c462_i32 = arith.constant 462 : i32
      %328 = tpu.dynamic_rotate %19 by %c462_i32 dim 1 : vector<1x512xf32>, i32 -> vector<1x512xf32>
      %c6_122 = arith.constant 6 : index
      %c5_123 = arith.constant 5 : index
      %329 = memref.load %arg3[%c6_122, %c5_123] : memref<7x7xf32, #tpu.memory_space<smem>>
      %330 = vector.extract_strided_slice %328 {offsets = [0, 128], sizes = [1, 256], strides = [1, 1]} : vector<1x512xf32> to vector<1x256xf32>
      %331 = vector.broadcast %329 : f32 to vector<1x256xf32>
      %332 = arith.mulf %331, %330 : vector<1x256xf32>
      %333 = arith.addf %327, %332 : vector<1x256xf32>
      %cst_124 = arith.constant 2.000000e+00 : f32
      %334 = vector.broadcast %cst_124 : f32 to vector<1x256xf32>
      %335 = arith.addf %25, %334 : vector<1x256xf32>
      %cst_125 = arith.constant 0.000000e+00 : f32
      %336 = vector.broadcast %cst_125 : f32 to vector<1x256xf32>
      %337 = arith.cmpf oge, %335, %336 : vector<1x256xf32>
      %cst_126 = arith.constant 1.600000e+01 : f32
      %338 = vector.broadcast %cst_126 : f32 to vector<1x256xf32>
      %339 = arith.cmpf olt, %335, %338 : vector<1x256xf32>
      %340 = arith.andi %337, %339 : vector<1x256xi1>
      %cst_127 = arith.constant 0.000000e+00 : f32
      %341 = vector.broadcast %cst_127 : f32 to vector<1x256xf32>
      %342 = arith.select %340, %333, %341 : vector<1x256xi1>, vector<1x256xf32>
      %343 = arith.addf %290, %342 : vector<1x256xf32>
      %cst_128 = arith.constant 0.000000e+00 : f32
      %344 = vector.broadcast %cst_128 : f32 to vector<1x256xf32>
      %c45_i32 = arith.constant 45 : i32
      %345 = tpu.dynamic_rotate %19 by %c45_i32 dim 1 : vector<1x512xf32>, i32 -> vector<1x512xf32>
      %c0_129 = arith.constant 0 : index
      %c6_130 = arith.constant 6 : index
      %346 = memref.load %arg3[%c0_129, %c6_130] : memref<7x7xf32, #tpu.memory_space<smem>>
      %347 = vector.extract_strided_slice %345 {offsets = [0, 128], sizes = [1, 256], strides = [1, 1]} : vector<1x512xf32> to vector<1x256xf32>
      %348 = vector.broadcast %346 : f32 to vector<1x256xf32>
      %349 = arith.mulf %348, %347 : vector<1x256xf32>
      %350 = arith.addf %344, %349 : vector<1x256xf32>
      %c29_i32 = arith.constant 29 : i32
      %351 = tpu.dynamic_rotate %19 by %c29_i32 dim 1 : vector<1x512xf32>, i32 -> vector<1x512xf32>
      %c1_131 = arith.constant 1 : index
      %c6_132 = arith.constant 6 : index
      %352 = memref.load %arg3[%c1_131, %c6_132] : memref<7x7xf32, #tpu.memory_space<smem>>
      %353 = vector.extract_strided_slice %351 {offsets = [0, 128], sizes = [1, 256], strides = [1, 1]} : vector<1x512xf32> to vector<1x256xf32>
      %354 = vector.broadcast %352 : f32 to vector<1x256xf32>
      %355 = arith.mulf %354, %353 : vector<1x256xf32>
      %356 = arith.addf %350, %355 : vector<1x256xf32>
      %c13_i32 = arith.constant 13 : i32
      %357 = tpu.dynamic_rotate %19 by %c13_i32 dim 1 : vector<1x512xf32>, i32 -> vector<1x512xf32>
      %c2_133 = arith.constant 2 : index
      %c6_134 = arith.constant 6 : index
      %358 = memref.load %arg3[%c2_133, %c6_134] : memref<7x7xf32, #tpu.memory_space<smem>>
      %359 = vector.extract_strided_slice %357 {offsets = [0, 128], sizes = [1, 256], strides = [1, 1]} : vector<1x512xf32> to vector<1x256xf32>
      %360 = vector.broadcast %358 : f32 to vector<1x256xf32>
      %361 = arith.mulf %360, %359 : vector<1x256xf32>
      %362 = arith.addf %356, %361 : vector<1x256xf32>
      %c509_i32 = arith.constant 509 : i32
      %363 = tpu.dynamic_rotate %19 by %c509_i32 dim 1 : vector<1x512xf32>, i32 -> vector<1x512xf32>
      %c3_135 = arith.constant 3 : index
      %c6_136 = arith.constant 6 : index
      %364 = memref.load %arg3[%c3_135, %c6_136] : memref<7x7xf32, #tpu.memory_space<smem>>
      %365 = vector.extract_strided_slice %363 {offsets = [0, 128], sizes = [1, 256], strides = [1, 1]} : vector<1x512xf32> to vector<1x256xf32>
      %366 = vector.broadcast %364 : f32 to vector<1x256xf32>
      %367 = arith.mulf %366, %365 : vector<1x256xf32>
      %368 = arith.addf %362, %367 : vector<1x256xf32>
      %c493_i32 = arith.constant 493 : i32
      %369 = tpu.dynamic_rotate %19 by %c493_i32 dim 1 : vector<1x512xf32>, i32 -> vector<1x512xf32>
      %c4_137 = arith.constant 4 : index
      %c6_138 = arith.constant 6 : index
      %370 = memref.load %arg3[%c4_137, %c6_138] : memref<7x7xf32, #tpu.memory_space<smem>>
      %371 = vector.extract_strided_slice %369 {offsets = [0, 128], sizes = [1, 256], strides = [1, 1]} : vector<1x512xf32> to vector<1x256xf32>
      %372 = vector.broadcast %370 : f32 to vector<1x256xf32>
      %373 = arith.mulf %372, %371 : vector<1x256xf32>
      %374 = arith.addf %368, %373 : vector<1x256xf32>
      %c477_i32 = arith.constant 477 : i32
      %375 = tpu.dynamic_rotate %19 by %c477_i32 dim 1 : vector<1x512xf32>, i32 -> vector<1x512xf32>
      %c5_139 = arith.constant 5 : index
      %c6_140 = arith.constant 6 : index
      %376 = memref.load %arg3[%c5_139, %c6_140] : memref<7x7xf32, #tpu.memory_space<smem>>
      %377 = vector.extract_strided_slice %375 {offsets = [0, 128], sizes = [1, 256], strides = [1, 1]} : vector<1x512xf32> to vector<1x256xf32>
      %378 = vector.broadcast %376 : f32 to vector<1x256xf32>
      %379 = arith.mulf %378, %377 : vector<1x256xf32>
      %380 = arith.addf %374, %379 : vector<1x256xf32>
      %c461_i32 = arith.constant 461 : i32
      %381 = tpu.dynamic_rotate %19 by %c461_i32 dim 1 : vector<1x512xf32>, i32 -> vector<1x512xf32>
      %c6_141 = arith.constant 6 : index
      %c6_142 = arith.constant 6 : index
      %382 = memref.load %arg3[%c6_141, %c6_142] : memref<7x7xf32, #tpu.memory_space<smem>>
      %383 = vector.extract_strided_slice %381 {offsets = [0, 128], sizes = [1, 256], strides = [1, 1]} : vector<1x512xf32> to vector<1x256xf32>
      %384 = vector.broadcast %382 : f32 to vector<1x256xf32>
      %385 = arith.mulf %384, %383 : vector<1x256xf32>
      %386 = arith.addf %380, %385 : vector<1x256xf32>
      %cst_143 = arith.constant 3.000000e+00 : f32
      %387 = vector.broadcast %cst_143 : f32 to vector<1x256xf32>
      %388 = arith.addf %25, %387 : vector<1x256xf32>
      %cst_144 = arith.constant 0.000000e+00 : f32
      %389 = vector.broadcast %cst_144 : f32 to vector<1x256xf32>
      %390 = arith.cmpf oge, %388, %389 : vector<1x256xf32>
      %cst_145 = arith.constant 1.600000e+01 : f32
      %391 = vector.broadcast %cst_145 : f32 to vector<1x256xf32>
      %392 = arith.cmpf olt, %388, %391 : vector<1x256xf32>
      %393 = arith.andi %390, %392 : vector<1x256xi1>
      %cst_146 = arith.constant 0.000000e+00 : f32
      %394 = vector.broadcast %cst_146 : f32 to vector<1x256xf32>
      %395 = arith.select %393, %386, %394 : vector<1x256xi1>, vector<1x256xf32>
      %396 = arith.addf %343, %395 : vector<1x256xf32>
      %cst_147 = arith.constant 0.000000e+00 : f32
      %397 = vector.broadcast %cst_147 : f32 to vector<1x256xf32>
      %398 = arith.subf %397, %396 : vector<1x256xf32>
      %399 = math.exp %398 : vector<1x256xf32>
      %cst_148 = arith.constant 1.000000e+00 : f32
      %400 = vector.broadcast %cst_148 : f32 to vector<1x256xf32>
      %401 = arith.addf %400, %399 : vector<1x256xf32>
      %402 = tpu.reciprocal %401 : vector<1x256xf32> -> vector<1x256xf32>
      %c0_149 = arith.constant 0 : index
      %c0_150 = arith.constant 0 : index
      %c0_151 = arith.constant 0 : index
      %403 = vector.load %arg4[%c0_149, %c0_150, %c0_151] : memref<1x1x256xf32, #tpu.memory_space<vmem>>, vector<1x1x256xf32>
      %404 = vector.shape_cast %403 : vector<1x1x256xf32> to vector<1x256xf32>
      %405 = vector.shape_cast %402 : vector<1x256xf32> to vector<1x1x256xf32>
      tpu.vector_store %arg4[%c0_149, %c0_150, %c0_151], %405 {strides = array<i32>} : memref<1x1x256xf32, #tpu.memory_space<vmem>>, vector<1x1x256xf32>,
    } else {
    }
    return
  }
  func.func @transform_0(%arg0: i32, %arg1: i32) -> (i32, i32, i32) {
    %c0_i32 = arith.constant 0 : i32
    %c0_i32_0 = arith.constant 0 : i32
    return %arg0, %arg1, %c0_i32 : i32, i32, i32
  }
  func.func @transform_1(%arg0: i32, %arg1: i32) -> (i32, i32) {
    %c0_i32 = arith.constant 0 : i32
    %c0_i32_0 = arith.constant 0 : i32
    %c0_i32_1 = arith.constant 0 : i32
    return %c0_i32, %c0_i32_0 : i32, i32
  }
  func.func @transform_2(%arg0: i32, %arg1: i32) -> (i32, i32, i32) {
    %c0_i32 = arith.constant 0 : i32
    %c0_i32_0 = arith.constant 0 : i32
    %c0_i32_1 = arith.constant 0 : i32
    return %arg0, %c0_i32, %c0_i32_0 : i32, i32, i32
  }
}

</mosaic_0001>

<bundles_post_ra>
// kernel: tpu_custom_call.1
= control target key start
LH: loop header
LB: loop body
LE: loop exit
PB: predicated region body
PF: predicated region fallthrough
CT: control target
= control target key end

     0   :  { %s2589_s0 = inlined_call_operand.hbm [shape: f32[2,4,256], index: 0, kind: input, shape index: {}]   ;;  %s2590_s1 = inlined_call_operand.hbm [shape: f32[7,7], index: 1, kind: input, shape index: {}]   ;;  %s2591_s2 = inlined_call_operand.hbm [shape: f32[2,1,256], index: 2, kind: output, shape index: {}]  }
   0x1   :  { %2603 = sst [smem:[#allocation21_spill]] %s2589_s0 }
   0x2   :  { %7 = vsyncpa [#allocation5], 0 }
   0x3   :  { %9 = vsyncpa [#allocation5 + $0x1], 0 }
   0x4   :  { %10 = vsyncpa [#allocation7], 0 }
   0x5   :  { %11 = vsyncpa [#allocation6], 0 }
   0x6   :  { %13 = vsyncpa [#allocation6 + $0x1], 0  ;;  %s1656_s9 = smov 0   ;;  %s1658_s10 = smov 0  }
   0x7   :  { %s1660_s11 = smov 0   ;;  %s1662_s12 = smov 0  }
   0x8   :  { %s1664_s13 = smov 0   ;;  %s1666_s14 = smov 0  }
   0x9 LB: > { %s1264_s15 = sadd.s32 4294967295, %s1586_s14   ;;  %s1265_s16 = sadd.s32 4294967294, %s1586_s14   ;;  %s1586_s14 = sphi %s1666_s14, %s19_s14   ;;  %s1582_s13 = sphi %s1664_s13, %s2674_s13   ;;  %s1578_s12 = sphi %s1662_s12, %s2673_s12   ;;  %s1574_s11 = sphi %s1660_s11, %s2672_s11   ;;  %s1570_s10 = sphi %s1658_s10, %s2671_s10   ;;  %s1566_s9 = sphi %s1656_s9, %s2670_s9  }
   0xa   : > { %p53_p0 = scmp.ne.s32.totalorder %s1570_s10, %s1566_s9  ;;  %p1690_p1 = scmp.eq.s32.totalorder %s1264_s15, 0 }
   0xb   : > { %p1694_p2 = scmp.eq.s32.totalorder %s1264_s15, 1  ;;  %p104_p3 = scmp.eq.s32.totalorder %s1265_s16, 1 }
   0xc   : > { %p1700_p4 = por %p1690_p1, %p53_p0  ;;  %p1266_p5 = scmp.ge.s32.totalorder %s1586_s14, 1 }
   0xd   : > { %p1705_p6 = por %p104_p3, %p53_p0  ;;  %p111_p7 = scmp.lt.s32.totalorder %s1586_s14, 3 }
   0xe   : > { %s31_s22 = sadd.s32 1, %s1582_s13  ;;  %s40_s23 = sadd.s32 1, %s1574_s11 }
   0xf   : > { %s2607_s20 = scalar_select %p1705_p6, 1, 0 }
  0x10   : > { %p1710_p8 = pnand %p1266_p5, %p111_p7  ;;  %p33_p12 = scmp.ge.s32.totalorder %s31_s22, 2 }
  0x11   : > { %p47_p13 = scmp.ne.s32.totalorder %s1574_s11, %s1570_s10  ;;  %p48_p0 = scmp.eq.s32.totalorder %s1586_s14, 0 }
  0x12   : > { %p1339_p10 = pneg %p1710_p8  ;;  %s1588_s24 = smov [#allocation8]  }
  0x13   : > { %s2676_s22 = smov (%p33_p12, %s31_s22), 0  ;;  %p1729_p3 = por %p48_p0, %p47_p13 }
  0x14   : > { %p1340_p11 = pnand %p1339_p10, %p1690_p1  ;;  %p1735_p5 = por %p1694_p2, %p47_p13 }
  0x15   : > { %s35_s29 = ssub.s32 %s1582_s13, %s2676_s22  ;;  %p1352_p7 = scmp.lt.s32.totalorder %s1586_s14, 2 }
  0x16   : > { %1342 = dma.hbm_to_smem (!%p1340_p11), %s2590_s1, 128, %s1588_s24, [#allocation7]  }
  0x17   : > { %s2610_s28 = scalar_select %p1735_p5, 1, 0 }
  0x18   : > { %p38_p10 = scmp.eq.s32.totalorder %s35_s29, 0  ;;  %s133_s30 = sand.u32 1, %s1574_s11  }
  0x19   : > { %s1269_s3 = sshll.u32 %s133_s30, 3  ;;  %s1329_s5 = sshll.u32 %s1582_s13, 7 }
  0x1a   : > { %s1744_s4 = scalar_select %p38_p10, %s1574_s11, %s40_s23  }
  0x1b   : > { %s2611_s0 = sld [smem:[#allocation21_spill]]  ;;  %s137_s15 = scalar_lea.vmem [#allocation4], %s1269_s3 }
  0x1c   : > { %s147_s16 = sshll.u32 %s137_s15, 4  ;;  %p1752_p2 = pnand %p1352_p7, %p1729_p3  ;;  %s148_s16 = int_to_ptr.vmem [resolvable:$true] %s147_s16 }
  0x1d   : > { %s134_s24 = scalar_lea.sflag [#allocation5], %s133_s30  ;;  %s1487_s25 = scalar_lea.vmem %s148_s16, 128 }
  0x1e   : > { %p1476_p11 = pneg %p1752_p2  ;;  %p1488_p12 = scmp.ne.s32.totalorder %s148_s16, %s1487_s25 }
  0x1f   : > { %s1589_s23 = smov [#allocation4]  }
  0x20   : > { %p1490_p13 = pnand %p1488_p12, %p1476_p11  ;;  %s1492_s26 = sshll.u32 %s1589_s23, 4  ;;  %s1493_s26 = int_to_ptr.vmem [resolvable:$false] %s1492_s26 }
  0x21   : > { %s145_s8 = scalar_lea.hbm %s2611_s0, %s1329_s5  ;;  %s1494_s29 = scalar_lea.vmem %s1493_s26, 256 }
  0x22   : > { %p1491_p0 = pneg %p1490_p13  ;;  %p1495_p10 = scmp.lt.s32.totalorder %s148_s16, %s1493_s26 }
  0x23   : > { %p1496_p9 = scmp.lt.s32.totalorder %s1494_s29, %s1487_s25 }
  0x25   : > { %p1497_p6 = por %p1496_p9, %p1495_p10 }
  0x27   : > { %p1498_p5 = pnand %p1497_p6, %p1491_p0 }
  0x29   : > { %1501 = shalt.err (!%p1498_p5)
}
  0x2a   : > { %1346 = dma.hbm_to_vmem [thread:$0]  (!%p1752_p2), %s145_s8, 128, %s148_s16, %s134_s24  }
  0x2b   : > { %156 = sbr.rel (%p1710_p8) target bundleno = 558 (0x22e), region = 28 }
  0x30   : > { %s1763_s27 = sand.u32 1, %s1570_s10  }
  0x31   : > { %s1273_s30 = sshll.u32 %s1763_s27, 3  ;;  %s159_s3 = scalar_lea.sflag [#allocation5], %s1763_s27 }
  0x32   : > { %s162_s5 = scalar_lea.vmem [#allocation4], %s1273_s30 }
  0x33   : > { %1553 = dma.done.wait (%p1700_p4), %s159_s3, 128  }
  0x34   : > { %1555 = vsyncadd (%p1700_p4), %s159_s3, 4294967168 }
  0x35   : > { %1557 = dma.done.wait (%p1690_p1), [#allocation7], 128  }
  0x36   : > { %1559 = vsyncadd (%p1690_p1), [#allocation7], 4294967168 }
  0x37   : > { %171 = sfence }
  0x38   : > { %v188_v0 = vld [vmem:[%s162_s5] sm:$0xff]  ;;  %vm192_vm0 = vcmask 1043456   ;;  %v217_v1 = vlaneseq  ;;  %v1590_v6 = vmov 0.0   ;;  %v1591_v11 = vmov 1966171168   ;;  %s1592_s17 = smov 51  }
  0x39   : > { %v190_v2 = vcombine.high %v188_v0, %v188_v0  ;;  %v193_v3 = vsel %vm192_vm0, %v188_v0, -inf  ;;  %v215_v12 = vunpack.c.l.s4 %v1591_v11  ;;  %v2615_v25 = vmov 0  ;;  %s1593_s19 = smov 35   ;;  %s1594_s21 = smov 19  }
  0x3a   : > { %v194_v4 = vrot.slane %v193_v3, 4  ;;  %vm268_vm1 = vcmp.lt.s32.totalorder %v217_v1, 128  ;;  %v1777_v18 = vshrl.u32 %v217_v1, 7  ;;  %vm1784_vm2 = vcmp.lt.s32.totalorder %v217_v1, 256  ;;  %s1595_s6 = smov 3   ;;  %s1596_s7 = smov 115  }
  0x3b   : > { %v200_v5 = vsel %vm192_vm0, %v190_v2, -inf  ;;  %270 = vst.msk [vmem:[#allocation3] sm:$0x1] %vm268_vm1, %v1590_v6  ;;  %271 = vst.msk [vmem:[#allocation3 + $0x3] sm:$0x1] %vm268_vm1, %v1590_v6  ;;  %v216_v17 = vunpack.c.0.s8 %v215_v12  ;;  %v2616_v25 = vsel %vm1784_vm2, 4294967295, %v2615_v25 }
  0x3c   : > { %v195_v7 = vmax.f32 %v193_v3, %v194_v4  ;;  %v201_v8 = vrot.slane %v200_v5, 4  ;;  %2613 = vst [vmem:[#allocation13_spill] sm:$0xff] %v1777_v18  ;;  %2617 = vst [vmem:[#allocation15_spill] sm:$0xff] %v2616_v25  ;;  %v295_v28 = vsub.s32 2, %v1777_v18  ;;  %v2594_v29 = vsub.s32 0, %v1777_v18  ;;  %s1597_s8 = smov 99  }
  0x3d   : > { %v1780_v22 = vsub.s32 %v216_v17, %v1777_v18  ;;  %v2593_v30 = vsub.s32 1, %v1777_v18  ;;  %v362_v35 = vsub.s32 3, %v1777_v18  ;;  %s1598_s15 = smov 83   ;;  %s1599_s16 = smov 50  }
  0x3e   : > { %v196_v9 = vrot.slane %v195_v7, 2  ;;  %v202_v10 = vmax.f32 %v200_v5, %v201_v8  ;;  %s1600_s18 = smov 34   ;;  %s1601_s24 = smov 18  }
  0x3f   : > { %2614 = vst [vmem:[#allocation14_spill] sm:$0xff] %v1780_v22  ;;  %s1602_s25 = smov 2   ;;  %s1603_s23 = smov 114  }
  0x40   : > { %v197_v13 = vmax.f32 %v195_v7, %v196_v9  ;;  %v203_v14 = vrot.slane %v202_v10, 2  ;;  %s1604_s26 = smov 98   ;;  %s1605_s29 = smov 82  }
  0x41   : > { %s1606_s30 = smov 49   ;;  %s1607_s3 = smov 33  }
  0x42   : > { %v198_v15 = vrot.slane %v197_v13, 1  ;;  %v204_v16 = vmax.f32 %v202_v10, %v203_v14  ;;  %s1608_s5 = smov 17   ;;  %v1990_v10 = vand.u32 127, %v217_v1  ;;  %s2131_s0 = sld [smem:[#allocation8 + $0x202]] }
  0x43   : > { %p2667_p4 = scmp.ne.s32.totalorder %s2610_s28, 0 }
  0x44   : > { %v199_v19 = vmax.f32 %v197_v13, %v198_v15  ;;  %v205_v20 = vrot.slane %v204_v16, 1  ;;  %v279_v13 = vadd.s32 128, %v1990_v10  ;;  %v280_v15 = vand.u32 15, %v1990_v10 }
  0x45   : > { %vm306_vm3 = vcmp.lt.s32.totalorder %v1990_v10, 51  ;;  %vm321_vm4 = vcmp.lt.s32.totalorder %v1990_v10, 35  ;;  %vm336_vm5 = vcmp.lt.s32.totalorder %v1990_v10, 19  ;;  %vm351_vm6 = vcmp.lt.s32.totalorder %v1990_v10, 3 }
  0x46   : > { %v206_v21 = vmax.f32 %v204_v16, %v205_v20  ;;  %v281_v16 = vand.u32 15, %v279_v13  ;;  %v2030_v20 = vcvt.s32.f32 %v280_v15  ;;  %vm371_vm7 = vcmp.lt.s32.totalorder %v1990_v10, 115 }
  0x47   : > { %vm545_vm8 = vcmp.lt.s32.totalorder %v1990_v10, 49  ;;  %vm443_vm9 = vcmp.lt.s32.totalorder %v1990_v10, 34  ;;  %vm428_vm10 = vcmp.lt.s32.totalorder %v1990_v10, 50  ;;  %vm560_vm11 = vcmp.lt.s32.totalorder %v1990_v10, 33 }
  0x48   : > { %v213_v23 = vcombine.low %v199_v19, %v206_v21  ;;  %v2032_v21 = vcvt.s32.f32 %v281_v16  ;;  %vm458_vm12 = vcmp.lt.s32.totalorder %v1990_v10, 18  ;;  %vm386_vm13 = vcmp.lt.s32.totalorder %v1990_v10, 99 }
  0x49   : > { %vm473_vm14 = vcmp.lt.s32.totalorder %v1990_v10, 2  ;;  %vm575_vm15 = vcmp.lt.s32.totalorder %v1990_v10, 17  ;;  %vm488_vm0 = vcmp.lt.s32.totalorder %v1990_v10, 114  ;;  %vm503_vm1 = vcmp.lt.s32.totalorder %v1990_v10, 98 }
  0x4a   : > { %v220_v24 = vrot.slane %v213_v23, %v1780_v22 }
  0x4c   : > { %v227_v26 = vrot.slane %v220_v24, %v1780_v22 }
  0x4e   : > { %233 = vst.msk [vmem:[#allocation2] sm:$0x3] %vm1784_vm2, %v227_v26 }
  0x55   : > { %v272_v27 = vld [vmem:[#allocation2] sm:$0x3] }
  0x56   : > { %275 = vst.msk [vmem:[#allocation3 + $0x1] sm:$0x3] %vm1784_vm2, %v272_v27 }
  0x5d   : > { %v1796_v31 = vld [vmem:[#allocation3] sm:$0xf] }
  0x5e   : > { %2618 = vst [vmem:[#allocation16_spill] sm:$0xff] %v1796_v31  ;;  %v1799_v32 = vrot.slane %v1796_v31, %v295_v28  ;;  %v1804_v33 = vrot.slane %v1796_v31, %v2594_v29  ;;  %v1811_v34 = vrot.slane %v1796_v31, %v2593_v30  ;;  %v1827_v36 = vrot.slane %v1796_v31, %v362_v35 }
  0x5f   : > { %v2051_v30 = vadd.f32 -3.0, %v2030_v20  ;;  %v2054_v29 = vadd.f32 -3.0, %v2032_v21 }
  0x60   : > { %2619 = vst [vmem:[#allocation17_spill] sm:$0xff] %v1804_v33  ;;  %304 = vrot.lane.b32.xlu1 %v1799_v32, %s1592_s17  ;;  %300 = vrot.lane.b32.xlu0 %v1804_v33, %s1592_s17 }
  0x61   : > { %2622 = vst [vmem:[#allocation20_spill] sm:$0xff] %v2054_v29 }
  0x64   : > { %315 = vrot.lane.b32.xlu1 %v1804_v33, %s1593_s19  ;;  %302 = vrot.lane.b32.xlu0 %v1811_v34, %s1592_s17  ;;  %s1609_s17 = smov 1  }
  0x68   : > { %319 = vrot.lane.b32.xlu1 %v1799_v32, %s1593_s19  ;;  %317 = vrot.lane.b32.xlu0 %v1811_v34, %s1593_s19  ;;  %s1610_s19 = smov 113  }
  0x6c   : > { %332 = vrot.lane.b32.xlu1 %v1811_v34, %s1594_s21  ;;  %330 = vrot.lane.b32.xlu0 %v1804_v33, %s1594_s21 }
  0x70   : > { %345 = vrot.lane.b32.xlu1 %v1804_v33, %s1595_s6  ;;  %334 = vrot.lane.b32.xlu0 %v1799_v32, %s1594_s21  ;;  %s1611_s21 = smov 97  }
  0x74   : > { %349 = vrot.lane.b32.xlu1 %v1799_v32, %s1595_s6  ;;  %347 = vrot.lane.b32.xlu0 %v1811_v34, %s1595_s6  ;;  %s1612_s6 = smov 81  }
  0x78   : > { %367 = vrot.lane.b32.xlu1 %v1799_v32, %s1596_s7  ;;  %365 = vrot.lane.b32.xlu0 %v1811_v34, %s1596_s7 }
  0x7c   : > { %380 = vrot.lane.b32.xlu1 %v1811_v34, %s1597_s8  ;;  %369 = vrot.lane.b32.xlu0 %v1827_v36, %s1596_s7  ;;  %s1613_s7 = smov 48  }
  0x80   : > { %384 = vrot.lane.b32.xlu1 %v1827_v36, %s1597_s8  ;;  %382 = vrot.lane.b32.xlu0 %v1799_v32, %s1597_s8  ;;  %s1614_s8 = smov 32  }
  0x84   : > { %397 = vrot.lane.b32.xlu1 %v1799_v32, %s1598_s15  ;;  %395 = vrot.lane.b32.xlu0 %v1811_v34, %s1598_s15 }
  0x88   : > { %422 = vrot.lane.b32.xlu1 %v1804_v33, %s1599_s16  ;;  %399 = vrot.lane.b32.xlu0 %v1827_v36, %s1598_s15  ;;  %s1615_s15 = smov 16  }
  0x8c   : > { %426 = vrot.lane.b32.xlu1 %v1799_v32, %s1599_s16  ;;  %424 = vrot.lane.b32.xlu0 %v1811_v34, %s1599_s16  ;;  %s1616_s16 = smov 112  }
  0x90   : > { %439 = vrot.lane.b32.xlu1 %v1811_v34, %s1600_s18  ;;  %437 = vrot.lane.b32.xlu0 %v1804_v33, %s1600_s18 }
  0x94   : > { %452 = vrot.lane.b32.xlu1 %v1804_v33, %s1601_s24  ;;  %441 = vrot.lane.b32.xlu0 %v1799_v32, %s1600_s18  ;;  %s1617_s18 = smov 96  }
  0x98   : > { %456 = vrot.lane.b32.xlu1 %v1799_v32, %s1601_s24  ;;  %454 = vrot.lane.b32.xlu0 %v1811_v34, %s1601_s24  ;;  %s1618_s24 = smov 80  }
  0x9c   : > { %469 = vrot.lane.b32.xlu1 %v1811_v34, %s1602_s25  ;;  %467 = vrot.lane.b32.xlu0 %v1804_v33, %s1602_s25 }
  0xa0   : > { %482 = vrot.lane.b32.xlu1 %v1811_v34, %s1603_s23  ;;  %471 = vrot.lane.b32.xlu0 %v1799_v32, %s1602_s25  ;;  %s1619_s25 = smov 47  }
  0xa4   : > { %486 = vrot.lane.b32.xlu1 %v1827_v36, %s1603_s23  ;;  %484 = vrot.lane.b32.xlu0 %v1799_v32, %s1603_s23  ;;  %s1620_s23 = smov 31  }
  0xa8   : > { %499 = vrot.lane.b32.xlu1 %v1799_v32, %s1604_s26  ;;  %497 = vrot.lane.b32.xlu0 %v1811_v34, %s1604_s26 }
  0xac   : > { %512 = vrot.lane.b32.xlu1 %v1811_v34, %s1605_s29  ;;  %501 = vrot.lane.b32.xlu0 %v1827_v36, %s1604_s26  ;;  %s1621_s26 = smov 15  }
  0xb0   : > { %516 = vrot.lane.b32.xlu1 %v1827_v36, %s1605_s29  ;;  %514 = vrot.lane.b32.xlu0 %v1799_v32, %s1605_s29  ;;  %s1622_s29 = smov 46  }
  0xb4   : > { %541 = vrot.lane.b32.xlu1 %v1811_v34, %s1606_s30  ;;  %539 = vrot.lane.b32.xlu0 %v1804_v33, %s1606_s30 }
  0xb8   : > { %554 = vrot.lane.b32.xlu1 %v1804_v33, %s1607_s3  ;;  %543 = vrot.lane.b32.xlu0 %v1799_v32, %s1606_s30  ;;  %s1975_s30 = sld [smem:[#allocation8]] }
  0xbc   : > { %558 = vrot.lane.b32.xlu1 %v1799_v32, %s1607_s3  ;;  %556 = vrot.lane.b32.xlu0 %v1811_v34, %s1607_s3  ;;  %s1981_s3 = sld [smem:[#allocation8 + $0x80]] }
  0xbe   : > { %v2623_v22 = vstv %s1975_s30 }
  0xc0   : > { %571 = vrot.lane.b32.xlu1 %v1811_v34, %s1608_s5  ;;  %569 = vrot.lane.b32.xlu0 %v1804_v33, %s1608_s5 }
  0xc2   : > { %v325_v24 = vstv %s1981_s3  ;;  %s2062_s3 = sld [smem:[#allocation8 + $0x102]] }
  0xc4   : > { %584 = vrot.lane.b32.xlu1 %v1804_v33, %s1609_s17  ;;  %573 = vrot.lane.b32.xlu0 %v1799_v32, %s1608_s5  ;;  %s1983_s5 = sld [smem:[#allocation8 + $0x100]] }
  0xc8   : > { %588 = vrot.lane.b32.xlu1 %v1799_v32, %s1609_s17  ;;  %586 = vrot.lane.b32.xlu0 %v1811_v34, %s1609_s17  ;;  %s1623_s17 = smov 30  }
  0xca   : > { %v2624_v29 = vstv %s1983_s5 }
  0xcc   : > { %601 = vrot.lane.b32.xlu1 %v1799_v32, %s1610_s19  ;;  %599 = vrot.lane.b32.xlu0 %v1811_v34, %s1610_s19 }
  0xd0   : > { %614 = vrot.lane.b32.xlu1 %v1811_v34, %s1611_s21  ;;  %603 = vrot.lane.b32.xlu0 %v1827_v36, %s1610_s19  ;;  %s1987_s19 = sld [smem:[#allocation8 + $0x180]] }
  0xd2   : > { %v1873_v37 = vpop.permute.xlu1 %304  ;;  %v1875_v38 = vpop.permute.xlu0 %300 }
  0xd4   : > { %618 = vrot.lane.b32.xlu1 %v1827_v36, %s1611_s21  ;;  %616 = vrot.lane.b32.xlu0 %v1799_v32, %s1611_s21  ;;  %s1992_s21 = sld [smem:[#allocation8 + $0x200]] }
  0xd6   : > { %v1879_v39 = vpop.permute.xlu1 %315  ;;  %v1881_v40 = vpop.permute.xlu0 %302 }
  0xd7   : > { %v308_v16 = vsel %vm306_vm3, %v1875_v38, %v1881_v40 }
  0xd8   : > { %631 = vrot.lane.b32.xlu1 %v1799_v32, %s1612_s6  ;;  %629 = vrot.lane.b32.xlu0 %v1811_v34, %s1612_s6  ;;  %v311_v13 = vmul.f32 %v2623_v22, %v308_v16 }
  0xda   : > { %v1885_v41 = vpop.permute.xlu1 %319  ;;  %v1887_v42 = vpop.permute.xlu0 %317 }
  0xdb   : > { %v323_v15 = vsel %vm321_vm4, %v1879_v39, %v1887_v42  ;;  %v322_v35 = vsel %vm321_vm4, %v1887_v42, %v1885_v41  ;;  %v2085_v39 = vadd.f32 -2.0, %v2030_v20  ;;  %vm605_vm4 = vcmp.lt.s32.totalorder %v1990_v10, 113 }
  0xdc   : > { %656 = vrot.lane.b32.xlu1 %v1804_v33, %s1613_s7  ;;  %633 = vrot.lane.b32.xlu0 %v1827_v36, %s1612_s6  ;;  %s1998_s6 = sld [smem:[#allocation8 + $0x280]]  ;;  %v326_v18 = vmul.f32 %v325_v24, %v323_v15  ;;  %v327_v31 = vmul.f32 %v325_v24, %v322_v35  ;;  %v2626_v35 = vstv %s1983_s5  ;;  %s1628_s5 = smov 111  }
  0xde   : > { %v1891_v43 = vpop.permute.xlu1 %332  ;;  %v1893_v44 = vpop.permute.xlu0 %330  ;;  %v328_v16 = vadd.f32 %v326_v18, %v311_v13 }
  0xdf   : > { %v338_v38 = vsel %vm336_vm5, %v1893_v44, %v1891_v43  ;;  %v307_v44 = vsel %vm306_vm3, %v1881_v40, %v1873_v37  ;;  %vm590_vm3 = vcmp.lt.s32.totalorder %v1990_v10, 1 }
  0xe0   : > { %660 = vrot.lane.b32.xlu1 %v1799_v32, %s1613_s7  ;;  %658 = vrot.lane.b32.xlu0 %v1811_v34, %s1613_s7  ;;  %s2000_s7 = sld [smem:[#allocation8 + $0x300]] }
  0xe2   : > { %v1897_v45 = vpop.permute.xlu1 %345  ;;  %v1899_v46 = vpop.permute.xlu0 %334 }
  0xe4   : > { %673 = vrot.lane.b32.xlu1 %v1811_v34, %s1614_s8  ;;  %671 = vrot.lane.b32.xlu0 %v1804_v33, %s1614_s8 }
  0xe6   : > { %v1903_v47 = vpop.permute.xlu1 %349  ;;  %v1905_v48 = vpop.permute.xlu0 %347 }
  0xe7   : > { %v352_v22 = vsel %vm351_vm6, %v1905_v48, %v1903_v47 }
  0xe8   : > { %686 = vrot.lane.b32.xlu1 %v1804_v33, %s1615_s15  ;;  %675 = vrot.lane.b32.xlu0 %v1799_v32, %s1614_s8  ;;  %s2005_s8 = sld [smem:[#allocation8 + $0x1]] }
  0xea   : > { %v1909_v49 = vpop.permute.xlu1 %367  ;;  %v1911_v50 = vpop.permute.xlu0 %365 }
  0xec   : > { %690 = vrot.lane.b32.xlu1 %v1799_v32, %s1615_s15  ;;  %688 = vrot.lane.b32.xlu0 %v1811_v34, %s1615_s15  ;;  %s2007_s15 = sld [smem:[#allocation8 + $0x81]] }
  0xee   : > { %v1915_v51 = vpop.permute.xlu1 %380  ;;  %v1917_v52 = vpop.permute.xlu0 %369 }
  0xf0   : > { %721 = vrot.lane.b32.xlu1 %v1799_v32, %s1616_s16  ;;  %719 = vrot.lane.b32.xlu0 %v1811_v34, %s1616_s16 }
  0xf2   : > { %v1921_v53 = vpop.permute.xlu1 %384  ;;  %v1923_v54 = vpop.permute.xlu0 %382 }
  0xf4   : > { %734 = vrot.lane.b32.xlu1 %v1811_v34, %s1617_s18  ;;  %723 = vrot.lane.b32.xlu0 %v1827_v36, %s1616_s16  ;;  %s2013_s16 = sld [smem:[#allocation8 + $0x101]] }
  0xf6   : > { %v1927_v55 = vpop.permute.xlu1 %397  ;;  %v1929_v56 = vpop.permute.xlu0 %395 }
  0xf8   : > { %738 = vrot.lane.b32.xlu1 %v1827_v36, %s1617_s18  ;;  %736 = vrot.lane.b32.xlu0 %v1799_v32, %s1617_s18  ;;  %s2016_s18 = sld [smem:[#allocation8 + $0x181]] }
  0xfa   : > { %v1933_v57 = vpop.permute.xlu1 %422  ;;  %v1935_v58 = vpop.permute.xlu0 %399 }
  0xfb   : > { %2620 = vst [vmem:[#allocation18_spill] sm:$0xff] %v1935_v58  ;;  %v341_v58 = vmul.f32 %v2624_v29, %v338_v38  ;;  %v353_v29 = vsel %vm351_vm6, %v1897_v45, %v1905_v48  ;;  %v2625_v45 = vstv %s1975_s30  ;;  %v2627_v38 = vstv %s1987_s19  ;;  %s2158_s30 = sld [smem:[#allocation8 + $0x282]]  ;;  %s1629_s19 = smov 126  }
  0xfc   : > { %751 = vrot.lane.b32.xlu1 %v1799_v32, %s1618_s24  ;;  %749 = vrot.lane.b32.xlu0 %v1811_v34, %s1618_s24  ;;  %v312_v48 = vmul.f32 %v2625_v45, %v307_v44  ;;  %vm401_vm6 = vcmp.lt.s32.totalorder %v1990_v10, 83 }
  0xfd   : > { %v343_v45 = vadd.f32 %v341_v58, %v328_v16  ;;  %v372_v58 = vsel %vm371_vm7, %v1909_v49, %v1917_v52 }
  0xfe   : > { %v1939_v59 = vpop.permute.xlu1 %426  ;;  %v1941_v60 = vpop.permute.xlu0 %424 }
 0x100   : > { %776 = vrot.lane.b32.xlu1 %v1804_v33, %s1619_s25  ;;  %753 = vrot.lane.b32.xlu0 %v1827_v36, %s1618_s24  ;;  %s1624_s24 = smov 127  }
 0x102   : > { %v1945_v61 = vpop.permute.xlu1 %439  ;;  %v1947_v62 = vpop.permute.xlu0 %437 }
 0x104   : > { %780 = vrot.lane.b32.xlu1 %v1799_v32, %s1619_s25  ;;  %778 = vrot.lane.b32.xlu0 %v1811_v34, %s1619_s25  ;;  %s2020_s25 = sld [smem:[#allocation8 + $0x201]] }
 0x106   : > { %v1951_v63 = vpop.permute.xlu1 %452  ;;  %v1953_v0 = vpop.permute.xlu0 %441 }
 0x107   : > { %v444_v52 = vsel %vm443_vm9, %v1945_v61, %v1953_v0  ;;  %v2631_v0 = vstv %s2007_s15  ;;  %s1632_s15 = smov 110  }
 0x108   : > { %793 = vrot.lane.b32.xlu1 %v1811_v34, %s1620_s23  ;;  %791 = vrot.lane.b32.xlu0 %v1804_v33, %s1620_s23 }
 0x10a   : > { %v1957_v2 = vpop.permute.xlu1 %456  ;;  %v1959_v3 = vpop.permute.xlu0 %454 }
 0x10c   : > { %806 = vrot.lane.b32.xlu1 %v1804_v33, %s1621_s26  ;;  %795 = vrot.lane.b32.xlu0 %v1799_v32, %s1620_s23  ;;  %s2022_s23 = sld [smem:[#allocation8 + $0x281]] }
 0x10e   : > { %v1963_v4 = vpop.permute.xlu1 %469  ;;  %v1965_v5 = vpop.permute.xlu0 %467 }
 0x110   : > { %810 = vrot.lane.b32.xlu1 %v1799_v32, %s1621_s26  ;;  %808 = vrot.lane.b32.xlu0 %v1811_v34, %s1621_s26  ;;  %s2028_s26 = sld [smem:[#allocation8 + $0x2]] }
 0x112   : > { %v1969_v6 = vpop.permute.xlu1 %482  ;;  %v1971_v7 = vpop.permute.xlu0 %471 }
 0x114   : > { %895 = vrot.lane.b32.xlu1 %v1811_v34, %s1622_s29  ;;  %893 = vrot.lane.b32.xlu0 %v1804_v33, %s1622_s29 }
 0x116   : > { %v1977_v8 = vpop.permute.xlu1 %486  ;;  %v1979_v9 = vpop.permute.xlu0 %484  ;;  %v549_v25 = vstv %s2028_s26  ;;  %s2106_s26 = sld [smem:[#allocation8 + $0x182]] }
 0x118   : > { %908 = vrot.lane.b32.xlu1 %v1804_v33, %s1623_s17  ;;  %897 = vrot.lane.b32.xlu0 %v1799_v32, %s1622_s29  ;;  %s1625_s29 = smov 14  }
 0x11a   : > { %v1994_v11 = vpop.permute.xlu1 %499  ;;  %v1996_v12 = vpop.permute.xlu0 %497 }
 0x11c   : > { %912 = vrot.lane.b32.xlu1 %v1799_v32, %s1623_s17  ;;  %910 = vrot.lane.b32.xlu0 %v1811_v34, %s1623_s17  ;;  %s2036_s17 = sld [smem:[#allocation8 + $0x82]] }
 0x11e   : > { %v2009_v1 = vpop.permute.xlu1 %512  ;;  %v2011_v14 = vpop.permute.xlu0 %501 }
 0x120   : > { %823 = vrot.lane.b32.xlu1 %v1799_v32, %s1624_s24  ;;  %821 = vrot.lane.b32.xlu0 %v1811_v34, %s1624_s24 }
 0x122   : > { %v2024_v17 = vpop.permute.xlu1 %516  ;;  %v2026_v19 = vpop.permute.xlu0 %514  ;;  %v564_v42 = vstv %s2036_s17  ;;  %s1627_s17 = smov 29  }
 0x123   : > { %2621 = vst [vmem:[#allocation19_spill] sm:$0xff] %v2024_v17  ;;  %v337_v17 = vsel %vm336_vm5, %v1891_v43, %v1899_v46  ;;  %vm518_vm5 = vcmp.lt.s32.totalorder %v1990_v10, 82 }
 0x124   : > { %923 = vrot.lane.b32.xlu1 %v1804_v33, %s1625_s29  ;;  %825 = vrot.lane.b32.xlu0 %v1827_v36, %s1624_s24  ;;  %s2088_s24 = sld [smem:[#allocation8 + $0x301]]  ;;  %v342_v15 = vmul.f32 %v2626_v35, %v337_v17  ;;  %v2629_v35 = vstv %s1992_s21 }
 0x125   : > { %s2236_s21 = sld [smem:[#allocation8 + $0x302]] }
 0x126   : > { %v542_v27 = vpop.permute.xlu1 %541  ;;  %v540_v28 = vpop.permute.xlu0 %539 }
 0x127   : > { %v547_v41 = vsel %vm545_vm8, %v540_v28, %v542_v27 }
 0x128   : > { %927 = vrot.lane.b32.xlu1 %v1799_v32, %s1625_s29  ;;  %925 = vrot.lane.b32.xlu0 %v1811_v34, %s1625_s29  ;;  %s1626_s29 = smov 45   ;;  %v550_v43 = vmul.f32 %v549_v25, %v547_v41  ;;  %v356_v41 = vmul.f32 %v2627_v38, %v353_v29 }
 0x12a   : > { %v555_v26 = vpop.permute.xlu1 %554  ;;  %v544_v23 = vpop.permute.xlu0 %543  ;;  %v522_v18 = vstv %s2088_s24  ;;  %v358_v29 = vadd.f32 %v356_v41, %v343_v45  ;;  %v2632_v41 = vstv %s2005_s8  ;;  %s1630_s8 = smov 13   ;;  %s1635_s24 = smov 94  }
 0x12b   : > { %v546_v28 = vsel %vm545_vm8, %v542_v27, %v544_v23  ;;  %vm529_vm8 = vcmp.ge.f32.partialorder %v2085_v39, 0.0 }
 0x12c   : > { %1012 = vrot.lane.b32.xlu1 %v1811_v34, %s1626_s29  ;;  %1010 = vrot.lane.b32.xlu0 %v1804_v33, %s1626_s29  ;;  %v551_v23 = vmul.f32 %v549_v25, %v546_v28  ;;  %v373_v25 = vsel %vm371_vm7, %v1911_v50, %v1909_v49  ;;  %v430_v49 = vsel %vm428_vm10, %v1933_v57, %v1941_v60  ;;  %v609_v57 = vstv %s2131_s0  ;;  %s1631_s0 = smov 95  }
 0x12d   : > { %vm620_vm7 = vcmp.lt.s32.totalorder %v1990_v10, 97 }
 0x12e   : > { %v559_v37 = vpop.permute.xlu1 %558  ;;  %v557_v40 = vpop.permute.xlu0 %556 }
 0x12f   : > { %v561_v46 = vsel %vm560_vm11, %v557_v40, %v559_v37  ;;  %v562_v47 = vsel %vm560_vm11, %v555_v26, %v557_v40  ;;  %v579_v26 = vstv %s2062_s3  ;;  %v329_v40 = vadd.f32 %v327_v31, %v312_v48  ;;  %s1634_s3 = smov 79  }
 0x130   : > { %v565_v24 = vmul.f32 %v564_v42, %v562_v47  ;;  %v566_v27 = vmul.f32 %v564_v42, %v561_v46  ;;  %1025 = vrot.lane.b32.xlu1 %v1804_v33, %s1627_s17  ;;  %1014 = vrot.lane.b32.xlu0 %v1799_v32, %s1626_s29  ;;  %v2628_v46 = vmov %v2627_v38  ;;  %v2148_v47 = vadd.f32 -2.0, %v2032_v21  ;;  %s1301_s29 = sld [smem:[#allocation8 + $0x283]] }
 0x131   : > { %v357_v17 = vmul.f32 %v2628_v46, %v352_v22  ;;  %v376_v33 = vmul.f32 %v2629_v35, %v373_v25  ;;  %v344_v31 = vadd.f32 %v342_v15, %v329_v40  ;;  %v594_v22 = vstv %s2106_s26  ;;  %s2444_s26 = sld [smem:[#allocation8 + $0x303]] }
 0x132   : > { %v567_v42 = vadd.f32 %v565_v24, %v550_v43  ;;  %v568_v28 = vadd.f32 %v566_v27, %v551_v23  ;;  %v572_v37 = vpop.permute.xlu1 %571  ;;  %v570_v44 = vpop.permute.xlu0 %569  ;;  %v445_v43 = vsel %vm443_vm9, %v1947_v62, %v1945_v61  ;;  %v460_v25 = vsel %vm458_vm12, %v1951_v63, %v1959_v3 }
 0x133   : > { %v577_v50 = vsel %vm575_vm15, %v570_v44, %v572_v37  ;;  %v2172_v48 = vadd.f32 %v357_v17, %v344_v31  ;;  %v2185_v15 = vadd.f32 %v376_v33, %v358_v29  ;;  %v2630_v38 = vmov %v2629_v35 }
 0x134   : > { %v580_v13 = vmul.f32 %v579_v26, %v577_v50  ;;  %1029 = vrot.lane.b32.xlu1 %v1799_v32, %s1627_s17  ;;  %1027 = vrot.lane.b32.xlu0 %v1811_v34, %s1627_s17  ;;  %v2196_v61 = vmul.f32 %v2630_v38, %v372_v58  ;;  %v2202_v33 = vsel %vm386_vm13, %v1923_v54, %v1921_v53  ;;  %vm531_vm9 = vcmp.lt.f32.partialorder %v2085_v39, 16.0  ;;  %s1636_s17 = smov 109  }
 0x135   : > { %v429_v63 = vsel %vm428_vm10, %v1941_v60, %v1939_v59  ;;  %v475_v40 = vsel %vm473_vm14, %v1965_v5, %v1963_v4  ;;  %v459_v59 = vsel %vm458_vm12, %v1959_v3, %v1957_v2  ;;  %v2634_v60 = vstv %s2013_s16  ;;  %s2408_s16 = sld [smem:[#allocation8 + $0x183]] }
 0x136   : > { %v582_v23 = vadd.f32 %v580_v13, %v567_v42  ;;  %v585_v24 = vpop.permute.xlu1 %584  ;;  %v574_v27 = vpop.permute.xlu0 %573  ;;  %v433_v42 = vmul.f32 %v2632_v41, %v430_v49  ;;  %v463_v50 = vmul.f32 %v2634_v60, %v460_v25  ;;  %v490_v5 = vsel %vm488_vm0, %v1969_v6, %v1979_v9 }
 0x137   : > { %v576_v62 = vsel %vm575_vm15, %v572_v37, %v574_v27  ;;  %v2633_v37 = vmov %v2631_v0  ;;  %v624_v2 = vstv %s2158_s30  ;;  %v388_v3 = vsel %vm386_vm13, %v1915_v51, %v1923_v54  ;;  %s1637_s30 = smov 78  }
 0x138   : > { %v581_v16 = vmul.f32 %v579_v26, %v576_v62  ;;  %838 = vrot.lane.b32.xlu1 %v1799_v32, %s1628_s5  ;;  %836 = vrot.lane.b32.xlu0 %v1811_v34, %s1628_s5  ;;  %v448_v26 = vmul.f32 %v2631_v0, %v445_v43  ;;  %v449_v44 = vmul.f32 %v2633_v37, %v444_v52  ;;  %v2638_v25 = vstv %s2020_s25  ;;  %s1298_s25 = sld [smem:[#allocation8 + $0x103]] }
 0x139   : > { %v2635_v31 = vmov %v2632_v41  ;;  %v2637_v43 = vmov %v2634_v60  ;;  %v474_v27 = vsel %vm473_vm14, %v1963_v4, %v1971_v7  ;;  %v505_v38 = vsel %vm503_vm1, %v1996_v12, %v1994_v11 }
 0x13a   : > { %v583_v46 = vadd.f32 %v581_v16, %v568_v28  ;;  %v589_v53 = vpop.permute.xlu1 %588  ;;  %v587_v17 = vpop.permute.xlu0 %586  ;;  %v434_v6 = vmul.f32 %v2635_v31, %v429_v63  ;;  %v450_v29 = vadd.f32 %v448_v26, %v433_v42  ;;  %v493_v16 = vmul.f32 %v2638_v25, %v490_v5 }
 0x13b   : > { %v591_v45 = vsel %vm590_vm3, %v587_v17, %v589_v53  ;;  %v592_v35 = vsel %vm590_vm3, %v585_v24, %v587_v17  ;;  %v464_v24 = vmul.f32 %v2637_v43, %v459_v59  ;;  %vm412_vm10 = vcmp.ge.f32.partialorder %v2051_v30, 0.0 }
 0x13c   : > { %v595_v28 = vmul.f32 %v594_v22, %v592_v35  ;;  %v596_v13 = vmul.f32 %v594_v22, %v591_v45  ;;  %938 = vrot.lane.b32.xlu1 %v1811_v34, %s1629_s19  ;;  %840 = vrot.lane.b32.xlu0 %v1827_v36, %s1628_s5  ;;  %v2636_v22 = vstv %s2016_s18  ;;  %v465_v62 = vadd.f32 %v463_v50, %v450_v29  ;;  %v2643_v35 = vld [vmem:[#allocation19_spill] sm:$0xff]  ;;  %s1633_s18 = smov 125   ;;  %s2461_s5 = sld [smem:[#allocation8 + $0x4]] }
 0x13d   : > { %v478_v58 = vmul.f32 %v2636_v22, %v475_v40  ;;  %vm414_vm11 = vcmp.lt.f32.partialorder %v2051_v30, 16.0  ;;  %v451_v7 = vadd.f32 %v449_v44, %v434_v6  ;;  %vm635_vm12 = vcmp.lt.s32.totalorder %v1990_v10, 81 }
 0x13e   : > { %v597_v49 = vadd.f32 %v595_v28, %v582_v23  ;;  %v598_v52 = vadd.f32 %v596_v13, %v583_v46  ;;  %v602_v51 = vpop.permute.xlu1 %601  ;;  %v600_v54 = vpop.permute.xlu0 %599  ;;  %v489_v23 = vsel %vm488_vm0, %v1979_v9, %v1977_v8  ;;  %v2274_v12 = vadd.f32 -1.0, %v2030_v20  ;;  %vm2342_vm0 = vmand %vm529_vm8, %vm531_vm9 }
 0x13f   : > { %v607_v4 = vsel %vm605_vm4, %v600_v54, %v602_v51  ;;  %v2639_v0 = vstv %s1998_s6  ;;  %v480_v41 = vadd.f32 %v478_v58, %v465_v62  ;;  %v2640_v42 = vmov %v2636_v22  ;;  %v2647_v58 = vld [vmem:[#allocation18_spill] sm:$0xff]  ;;  %vm2354_vm3 = vmand %vm412_vm10, %vm414_vm11  ;;  %s2374_s6 = sld [smem:[#allocation8 + $0x3]] }
 0x140   : > { %v610_v63 = vmul.f32 %v609_v57, %v607_v4  ;;  %942 = vrot.lane.b32.xlu1 %v1827_v36, %s1629_s19  ;;  %940 = vrot.lane.b32.xlu0 %v1799_v32, %s1629_s19  ;;  %v391_v26 = vmul.f32 %v2639_v0, %v388_v3  ;;  %v479_v37 = vmul.f32 %v2640_v42, %v474_v27  ;;  %vm530_vm13 = vcmp.ge.f32.partialorder %v2148_v47, 0.0  ;;  %v2644_v3 = vld [vmem:[#allocation17_spill] sm:$0xff]  ;;  %s2463_s19 = sld [smem:[#allocation8 + $0x84]] }
 0x141   : > { %vm532_vm14 = vcmp.lt.f32.partialorder %v2148_v47, 16.0  ;;  %v520_v8 = vsel %vm518_vm5, %v2009_v1, %v2026_v19  ;;  %v403_v9 = vsel %vm401_vm6, %v1929_v56, %v1927_v55  ;;  %v466_v44 = vadd.f32 %v464_v24, %v451_v7 }
 0x142   : > { %v2641_v40 = vstv %s2022_s23  ;;  %v612_v53 = vadd.f32 %v610_v63, %v597_v49  ;;  %v615_v17 = vpop.permute.xlu1 %614  ;;  %v604_v59 = vpop.permute.xlu0 %603  ;;  %v2642_v60 = vmov %v2638_v25  ;;  %v495_v45 = vadd.f32 %v493_v16, %v480_v41  ;;  %s2425_s23 = sld [smem:[#allocation8 + $0x203]] }
 0x143   : > { %v508_v46 = vmul.f32 %v2641_v40, %v505_v38  ;;  %v494_v50 = vmul.f32 %v2642_v60, %v489_v23  ;;  %v504_v1 = vsel %vm503_vm1, %v1994_v11, %v2011_v14  ;;  %v606_v56 = vsel %vm605_vm4, %v602_v51, %v604_v59 }
 0x144   : > { %v519_v5 = vsel %vm518_vm5, %v2026_v19, %v2643_v35  ;;  %v523_v28 = vmul.f32 %v522_v18, %v520_v8  ;;  %v611_v13 = vmul.f32 %v609_v57, %v606_v56  ;;  %1042 = vrot.lane.b32.xlu1 %v1811_v34, %s1630_s8  ;;  %1040 = vrot.lane.b32.xlu0 %v2644_v3, %s1630_s8  ;;  %v639_v31 = vstv %s2236_s21  ;;  %s1638_s21 = smov 93  }
 0x145   : > { %v2645_v11 = vmov %v2639_v0  ;;  %v393_v6 = vadd.f32 %v391_v26, %v2185_v15  ;;  %v2646_v29 = vstv %s2000_s7  ;;  %v481_v22 = vadd.f32 %v479_v37, %v466_v44  ;;  %s2384_s7 = sld [smem:[#allocation8 + $0x83]] }
 0x146   : > { %v392_v14 = vmul.f32 %v2645_v11, %v2202_v33  ;;  %v406_v19 = vmul.f32 %v2646_v29, %v403_v9  ;;  %v402_v57 = vsel %vm401_vm6, %v1927_v55, %v2647_v58  ;;  %v510_v43 = vadd.f32 %v508_v46, %v495_v45  ;;  %v619_v51 = vpop.permute.xlu1 %618  ;;  %v617_v54 = vpop.permute.xlu0 %616  ;;  %vm2366_vm6 = vmand %vm530_vm13, %vm532_vm14 }
 0x147   : > { %v2648_v24 = vmov %v2641_v40  ;;  %v613_v49 = vadd.f32 %v611_v13, %v598_v52  ;;  %v496_v62 = vadd.f32 %v494_v50, %v481_v22  ;;  %v524_v33 = vmul.f32 %v522_v18, %v519_v5 }
 0x148   : > { %v509_v27 = vmul.f32 %v2648_v24, %v504_v1  ;;  %v621_v15 = vsel %vm620_vm7, %v617_v54, %v619_v51  ;;  %v622_v25 = vsel %vm620_vm7, %v615_v17, %v617_v54  ;;  %v525_v16 = vadd.f32 %v523_v28, %v510_v43  ;;  %851 = vrot.lane.b32.xlu1 %v1811_v34, %s1631_s0 }
 0x149   : > { %v625_v38 = vmul.f32 %v624_v2, %v622_v25  ;;  %v626_v55 = vmul.f32 %v624_v2, %v621_v15  ;;  %1044 = vrot.lane.b32.xlu0 %v1799_v32, %s1630_s8  ;;  %vm646_vm15 = vcmp.ge.f32.partialorder %v2274_v12, 0.0  ;;  %v379_v18 = vadd.f32 %v2196_v61, %v2172_v48  ;;  %v2654_v61 = vld [vmem:[#allocation20_spill] sm:$0xff]  ;;  %s1639_s8 = smov 77  }
 0x14a   : > { %v408_v52 = vadd.f32 %v406_v19, %v393_v6  ;;  %vm648_vm1 = vcmp.lt.f32.partialorder %v2274_v12, 16.0  ;;  %v645_v2 = vadd.f32 -1.0, %v2032_v21  ;;  %v2651_v7 = vmov %v2646_v29  ;;  %v632_v41 = vpop.permute.xlu1 %631  ;;  %v630_v48 = vpop.permute.xlu0 %629 }
 0x14b   : > { %v407_v23 = vmul.f32 %v2651_v7, %v402_v57  ;;  %v511_v63 = vadd.f32 %v509_v27, %v496_v62  ;;  %v627_v0 = vadd.f32 %v625_v38, %v612_v53  ;;  %v628_v26 = vadd.f32 %v626_v55, %v613_v49  ;;  %vm2380_vm7 = vmand %vm646_vm15, %vm648_vm1  ;;  %v2661_v49 = vld [vmem:[#allocation16_spill] sm:$0xff] }
 0x14c   : > { %vm413_vm4 = vcmp.ge.f32.partialorder %v2654_v61, 0.0  ;;  %vm415_vm5 = vcmp.lt.f32.partialorder %v2654_v61, 16.0  ;;  %v637_v42 = vsel %vm635_vm12, %v630_v48, %v632_v41  ;;  %v394_v37 = vadd.f32 %v392_v14, %v379_v18  ;;  %855 = vrot.lane.b32.xlu1 %v1827_v36, %s1631_s0 }
 0x14d   : > { %v526_v30 = vadd.f32 %v524_v33, %v511_v63  ;;  %v535_v9 = vsel %vm2342_vm0, %v525_v16, 0.0  ;;  %v640_v44 = vmul.f32 %v639_v31, %v637_v42  ;;  %853 = vrot.lane.b32.xlu0 %v1799_v32, %s1631_s0  ;;  %vm647_vm8 = vcmp.ge.f32.partialorder %v645_v2, 0.0  ;;  %vm2392_vm10 = vmand %vm413_vm4, %vm415_vm5  ;;  %s1305_s0 = sld [smem:[#allocation8 + $0x104]] }
 0x14e   : > { %v418_v40 = vsel %vm2354_vm3, %v408_v52, 0.0  ;;  %v409_v46 = vadd.f32 %v407_v23, %v394_v37  ;;  %v657_v17 = vpop.permute.xlu1 %656  ;;  %vm649_vm9 = vcmp.lt.f32.partialorder %v645_v2, 16.0  ;;  %v634_v59 = vpop.permute.xlu0 %633  ;;  %vm662_vm11 = vcmp.lt.s32.totalorder %v1990_v10, 48 }
 0x14f   : > { %v642_v53 = vadd.f32 %v640_v44, %v627_v0  ;;  %v537_v60 = vadd.f32 %v535_v9, %v418_v40  ;;  %v636_v50 = vsel %vm635_vm12, %v632_v41, %v634_v59  ;;  %v536_v45 = vsel %vm2366_vm6, %v526_v30, 0.0  ;;  %vm651_vm13 = vmand %vm647_vm8, %vm649_vm9 }
 0x150   : > { %v641_v56 = vmul.f32 %v639_v31, %v636_v50  ;;  %955 = vrot.lane.b32.xlu1 %v1799_v32, %s1632_s15  ;;  %v419_v5 = vsel %vm2392_vm10, %v409_v46, 0.0  ;;  %vm677_vm12 = vcmp.lt.s32.totalorder %v1990_v10, 32  ;;  %v666_v19 = vstv %s2374_s6  ;;  %s1310_s6 = sld [smem:[#allocation8 + $0x5]] }
 0x151   : > { %v652_v1 = vsel %vm2380_vm7, %v642_v53, 0.0  ;;  %953 = vrot.lane.b32.xlu0 %v1811_v34, %s1632_s15  ;;  %v538_v31 = vadd.f32 %v536_v45, %v419_v5  ;;  %v681_v22 = vstv %s2384_s7  ;;  %v703_v51 = vrot.slane %v2661_v49, 1  ;;  %s1311_s7 = sld [smem:[#allocation8 + $0x85]] }
 0x152   : > { %v2405_v35 = vadd.f32 %v652_v1, %v537_v60  ;;  %v643_v28 = vadd.f32 %v641_v56, %v628_v26  ;;  %v661_v13 = vpop.permute.xlu1 %660  ;;  %v659_v3 = vpop.permute.xlu0 %658  ;;  %v702_v54 = vstv %s2408_s16  ;;  %vm692_vm14 = vcmp.lt.s32.totalorder %v1990_v10, 16  ;;  %v2662_v26 = vld [vmem:[#allocation13_spill] sm:$0xff]  ;;  %s1312_s16 = sld [smem:[#allocation8 + $0x105]] }
 0x153   : > { %v663_v11 = vsel %vm662_vm11, %v659_v3, %v661_v13  ;;  %v664_v14 = vsel %vm662_vm11, %v657_v17, %v659_v3  ;;  %v705_v55 = vmul.f32 %v703_v51, %v702_v54  ;;  %v696_v18 = vstv %s1298_s25  ;;  %s1318_s25 = sld [smem:[#allocation8 + $0x86]] }
 0x154   : > { %v653_v6 = vsel %vm651_vm13, %v643_v28, 0.0  ;;  %1055 = vrot.lane.b32.xlu1 %v1811_v34, %s1633_s18  ;;  %v667_v24 = vmul.f32 %v666_v19, %v664_v14  ;;  %v668_v16 = vmul.f32 %v666_v19, %v663_v11  ;;  %v2663_v41 = vsub.s32 0, %v2662_v26 }
 0x155   : > { %957 = vrot.lane.b32.xlu0 %v1827_v36, %s1632_s15  ;;  %v2415_v29 = vadd.f32 %v653_v6, %v538_v31  ;;  %vm725_vm15 = vcmp.lt.s32.totalorder %v1990_v10, 112  ;;  %v729_v39 = vstv %s2425_s23  ;;  %v2664_v47 = vsub.s32 1, %v2662_v26  ;;  %s1306_s15 = sld [smem:[#allocation8 + $0x184]] }
 0x156   : > { %v674_v58 = vpop.permute.xlu1 %673  ;;  %v672_v57 = vpop.permute.xlu0 %671  ;;  %v710_v48 = vrot.slane %v705_v55, %v2663_v41  ;;  %vm740_vm0 = vcmp.lt.s32.totalorder %v1990_v10, 96  ;;  %v744_v50 = vstv %s1301_s29  ;;  %vm755_vm1 = vcmp.lt.s32.totalorder %v1990_v10, 80  ;;  %s1307_s23 = sld [smem:[#allocation8 + $0x204]] }
 0x157   : > { %v679_v43 = vsel %vm677_vm12, %v672_v57, %v674_v58  ;;  %v714_v40 = vrot.slane %v705_v55, %v2664_v47  ;;  %v759_v31 = vstv %s2444_s26  ;;  %vm766_vm3 = vcmp.ge.f32.partialorder %v2030_v20, 0.0  ;;  %s1308_s29 = sld [smem:[#allocation8 + $0x284]] }
 0x158   : > { %v682_v27 = vmul.f32 %v681_v22, %v679_v43  ;;  %1059 = vrot.lane.b32.xlu1 %v1827_v36, %s1633_s18  ;;  %vm768_vm4 = vcmp.lt.f32.partialorder %v2030_v20, 16.0  ;;  %vm767_vm6 = vcmp.ge.f32.partialorder %v2032_v21, 0.0  ;;  %vm769_vm7 = vcmp.lt.f32.partialorder %v2032_v21, 16.0  ;;  %s1314_s26 = sld [smem:[#allocation8 + $0x205]] }
 0x159   : > { %1057 = vrot.lane.b32.xlu0 %v1799_v32, %s1633_s18  ;;  %vm770_vm5 = vmand %vm766_vm3, %vm768_vm4  ;;  %vm782_vm8 = vcmp.lt.s32.totalorder %v1990_v10, 47  ;;  %vm797_vm10 = vcmp.lt.s32.totalorder %v1990_v10, 31  ;;  %vm812_vm11 = vcmp.lt.s32.totalorder %v1990_v10, 15  ;;  %vm899_vm13 = vcmp.lt.s32.totalorder %v1990_v10, 46  ;;  %s1317_s18 = sld [smem:[#allocation8 + $0x6]] }
 0x15a   : > { %v684_v62 = vadd.f32 %v682_v27, %v667_v24  ;;  %v687_v33 = vpop.permute.xlu1 %686  ;;  %v676_v15 = vpop.permute.xlu0 %675  ;;  %vm771_vm9 = vmand %vm767_vm6, %vm769_vm7  ;;  %vm842_vm3 = vcmp.lt.s32.totalorder %v1990_v10, 111  ;;  %vm944_vm4 = vcmp.lt.s32.totalorder %v1990_v10, 126  ;;  %vm857_vm6 = vcmp.lt.s32.totalorder %v1990_v10, 95 }
 0x15b   : > { %v678_v25 = vsel %vm677_vm12, %v674_v58, %v676_v15  ;;  %vm914_vm12 = vcmp.lt.s32.totalorder %v1990_v10, 30  ;;  %vm959_vm7 = vcmp.lt.s32.totalorder %v1990_v10, 110 }
 0x15c   : > { %v683_v38 = vmul.f32 %v681_v22, %v678_v25  ;;  %868 = vrot.lane.b32.xlu1 %v1799_v32, %s1634_s3 }
 0x15d   : > { %866 = vrot.lane.b32.xlu0 %v1811_v34, %s1634_s3 }
 0x15e   : > { %v685_v52 = vadd.f32 %v683_v38, %v668_v16  ;;  %v691_v4 = vpop.permute.xlu1 %690  ;;  %v689_v2 = vpop.permute.xlu0 %688 }
 0x15f   : > { %v693_v7 = vsel %vm692_vm14, %v689_v2, %v691_v4  ;;  %v694_v23 = vsel %vm692_vm14, %v687_v33, %v689_v2  ;;  %vm827_vm14 = vcmp.lt.s32.totalorder %v1990_v10, 127 }
 0x160   : > { %v697_v63 = vmul.f32 %v696_v18, %v694_v23  ;;  %v698_v0 = vmul.f32 %v696_v18, %v693_v7  ;;  %968 = vrot.lane.b32.xlu1 %v1811_v34, %s1635_s24  ;;  %v786_v18 = vstv %s2461_s5  ;;  %s1315_s5 = sld [smem:[#allocation8 + $0x285]] }
 0x161   : > { %870 = vrot.lane.b32.xlu0 %v1827_v36, %s1634_s3  ;;  %s1313_s3 = sld [smem:[#allocation8 + $0x185]] }
 0x162   : > { %v699_v61 = vadd.f32 %v697_v63, %v684_v62  ;;  %v700_v42 = vadd.f32 %v698_v0, %v685_v52  ;;  %v722_v37 = vpop.permute.xlu1 %721  ;;  %v720_v8 = vpop.permute.xlu0 %719 }
 0x163   : > { %v727_v30 = vsel %vm725_vm15, %v720_v8, %v722_v37 }
 0x164   : > { %v717_v9 = vadd.f32 %v710_v48, %v699_v61  ;;  %v730_v44 = vmul.f32 %v729_v39, %v727_v30  ;;  %972 = vrot.lane.b32.xlu1 %v1827_v36, %s1635_s24  ;;  %v718_v12 = vadd.f32 %v714_v40, %v700_v42 }
 0x165   : > { %970 = vrot.lane.b32.xlu0 %v1799_v32, %s1635_s24  ;;  %s1319_s24 = sld [smem:[#allocation8 + $0x106]] }
 0x166   : > { %v732_v46 = vadd.f32 %v730_v44, %v717_v9  ;;  %v735_v53 = vpop.permute.xlu1 %734  ;;  %v724_v17 = vpop.permute.xlu0 %723 }
 0x167   : > { %v726_v59 = vsel %vm725_vm15, %v722_v37, %v724_v17  ;;  %vm929_vm15 = vcmp.lt.s32.totalorder %v1990_v10, 14 }
 0x168   : > { %v731_v60 = vmul.f32 %v729_v39, %v726_v59  ;;  %1072 = vrot.lane.b32.xlu1 %v1799_v32, %s1636_s17  ;;  %v903_v59 = vstv %s1310_s6  ;;  %s1275_s6 = sshll.u32 %s1763_s27, 1 }
 0x169   : > { %1070 = vrot.lane.b32.xlu0 %v1811_v34, %s1636_s17 }
 0x16a   : > { %v733_v45 = vadd.f32 %v731_v60, %v718_v12  ;;  %v739_v1 = vpop.permute.xlu1 %738  ;;  %v737_v56 = vpop.permute.xlu0 %736  ;;  %v918_v12 = vstv %s1311_s7  ;;  %s1330_s7 = sshll.u32 %s1578_s12, 5  ;;  %s1640_s12 = smov [#allocation9]  }
 0x16b   : > { %v741_v5 = vsel %vm740_vm0, %v737_v56, %v739_v1  ;;  %v742_v28 = vsel %vm740_vm0, %v735_v53, %v737_v56  ;;  %vm1016_vm0 = vcmp.lt.s32.totalorder %v1990_v10, 45 }
 0x16c   : > { %v745_v13 = vmul.f32 %v744_v50, %v742_v28  ;;  %v746_v3 = vmul.f32 %v744_v50, %v741_v5  ;;  %983 = vrot.lane.b32.xlu1 %v1811_v34, %s1637_s30 }
 0x16d   : > { %1074 = vrot.lane.b32.xlu0 %v1827_v36, %s1636_s17  ;;  %s1320_s17 = sld [smem:[#allocation8 + $0x186]] }
 0x16e   : > { %v747_v11 = vadd.f32 %v745_v13, %v732_v46  ;;  %v748_v14 = vadd.f32 %v746_v3, %v733_v45  ;;  %v752_v6 = vpop.permute.xlu1 %751  ;;  %v750_v19 = vpop.permute.xlu0 %749  ;;  %v831_v3 = vstv %s1306_s15  ;;  %s187_s15 = scalar_lea.vmem [#allocation9], %s1275_s6 }
 0x16f   : > { %v757_v22 = vsel %vm755_vm1, %v750_v19, %v752_v6 }
 0x170   : > { %v760_v58 = vmul.f32 %v759_v31, %v757_v22  ;;  %987 = vrot.lane.b32.xlu1 %v1827_v36, %s1637_s30 }
 0x171   : > { %985 = vrot.lane.b32.xlu0 %v1799_v32, %s1637_s30  ;;  %s2505_s30 = sld [smem:[#allocation8 + $0x304]] }
 0x172   : > { %v762_v57 = vadd.f32 %v760_v58, %v747_v11  ;;  %v777_v43 = vpop.permute.xlu1 %776  ;;  %v754_v24 = vpop.permute.xlu0 %753 }
 0x173   : > { %v756_v27 = vsel %vm755_vm1, %v752_v6, %v754_v24  ;;  %vm1031_vm1 = vcmp.lt.s32.totalorder %v1990_v10, 29 }
 0x174   : > { %v772_v49 = vsel %vm770_vm5, %v762_v57, 0.0  ;;  %v761_v51 = vmul.f32 %v759_v31, %v756_v27  ;;  %1087 = vrot.lane.b32.xlu1 %v1799_v32, %s1638_s21  ;;  %vm1046_vm5 = vcmp.lt.s32.totalorder %v1990_v10, 13 }
 0x175   : > { %1085 = vrot.lane.b32.xlu0 %v1811_v34, %s1638_s21  ;;  %v2473_v54 = vadd.f32 %v772_v49, %v2405_v35  ;;  %v801_v35 = vstv %s2463_s19  ;;  %v933_v49 = vstv %s1312_s16  ;;  %s2514_s19 = sld [smem:[#allocation8 + $0x206]]  ;;  %s1171_s16 = sshll.u32 %s187_s15, 4  ;;  %s1172_s16 = int_to_ptr.vmem [resolvable:$true] %s1171_s16 }
 0x176   : > { %v763_v62 = vadd.f32 %v761_v51, %v748_v14  ;;  %v781_v33 = vpop.permute.xlu1 %780  ;;  %v779_v15 = vpop.permute.xlu0 %778 }
 0x177   : > { %v783_v25 = vsel %vm782_vm8, %v779_v15, %v781_v33  ;;  %v784_v16 = vsel %vm782_vm8, %v777_v43, %v779_v15  ;;  %vm1061_vm8 = vcmp.lt.s32.totalorder %v1990_v10, 125 }
 0x178   : > { %v773_v38 = vsel %vm771_vm9, %v763_v62, 0.0  ;;  %1100 = vrot.lane.b32.xlu1 %v1811_v34, %s1639_s8  ;;  %v787_v7 = vmul.f32 %v786_v18, %v784_v16  ;;  %v788_v41 = vmul.f32 %v786_v18, %v783_v25  ;;  %vm872_vm9 = vcmp.lt.s32.totalorder %v1990_v10, 79 }
 0x179   : > { %1089 = vrot.lane.b32.xlu0 %v1827_v36, %s1638_s21  ;;  %v2479_v55 = vadd.f32 %v773_v38, %v2415_v29  ;;  %v816_v29 = vstv %s1305_s0  ;;  %s1316_s21 = sld [smem:[#allocation8 + $0x305]] }
 0x17a   : > { %v794_v52 = vpop.permute.xlu1 %793  ;;  %v792_v4 = vpop.permute.xlu0 %791  ;;  %s2534_s0 = sld [smem:[#allocation8 + $0x306]] }
 0x17b   : > { %v799_v2 = vsel %vm797_vm10, %v792_v4, %v794_v52 }
 0x17c   : > { %v802_v23 = vmul.f32 %v801_v35, %v799_v2  ;;  %1104 = vrot.lane.b32.xlu1 %v1827_v36, %s1639_s8 }
 0x17d   : > { %1102 = vrot.lane.b32.xlu0 %v1799_v32, %s1639_s8  ;;  %s2526_s8 = sld [smem:[#allocation8 + $0x286]] }
 0x17e   : > { %v804_v34 = vadd.f32 %v802_v23, %v787_v7  ;;  %v807_v63 = vpop.permute.xlu1 %806  ;;  %v796_v0 = vpop.permute.xlu0 %795 }
 0x17f   : > { %v798_v26 = vsel %vm797_vm10, %v794_v52, %v796_v0  ;;  %v1035_v0 = vstv %s1318_s25 }
 0x180   : > { %v803_v48 = vmul.f32 %v801_v35, %v798_v26 }
 0x182   : > { %v805_v39 = vadd.f32 %v803_v48, %v788_v41  ;;  %v811_v61 = vpop.permute.xlu1 %810  ;;  %v809_v42 = vpop.permute.xlu0 %808 }
 0x183   : > { %v813_v37 = vsel %vm812_vm11, %v809_v42, %v811_v61  ;;  %v814_v8 = vsel %vm812_vm11, %v807_v63, %v809_v42  ;;  %v1020_v63 = vstv %s1317_s18 }
 0x184   : > { %v817_v30 = vmul.f32 %v816_v29, %v814_v8  ;;  %v818_v9 = vmul.f32 %v816_v29, %v813_v37  ;;  %v846_v8 = vstv %s1307_s23  ;;  %s1169_s23 = scalar_lea.hbm %s2591_s2, %s1330_s7 }
 0x186   : > { %v819_v32 = vadd.f32 %v817_v30, %v804_v34  ;;  %v820_v36 = vadd.f32 %v818_v9, %v805_v39  ;;  %v896_v44 = vpop.permute.xlu1 %895  ;;  %v894_v47 = vpop.permute.xlu0 %893 }
 0x187   : > { %v901_v40 = vsel %vm899_vm13, %v894_v47, %v896_v44 }
 0x188   : > { %v904_v56 = vmul.f32 %v903_v59, %v901_v40 }
 0x18a   : > { %v909_v46 = vpop.permute.xlu1 %908  ;;  %v898_v53 = vpop.permute.xlu0 %897 }
 0x18b   : > { %v900_v17 = vsel %vm899_vm13, %v896_v44, %v898_v53 }
 0x18c   : > { %v905_v5 = vmul.f32 %v903_v59, %v900_v17 }
 0x18e   : > { %v913_v60 = vpop.permute.xlu1 %912  ;;  %v911_v50 = vpop.permute.xlu0 %910 }
 0x18f   : > { %v915_v45 = vsel %vm914_vm12, %v911_v50, %v913_v60  ;;  %v916_v1 = vsel %vm914_vm12, %v909_v46, %v911_v50 }
 0x190   : > { %v919_v28 = vmul.f32 %v918_v12, %v916_v1  ;;  %v920_v13 = vmul.f32 %v918_v12, %v915_v45  ;;  %v948_v12 = vstv %s1313_s3  ;;  %s1157_s3 = scalar_lea.sflag [#allocation6], %s1763_s27 }
 0x192   : > { %v921_v31 = vadd.f32 %v919_v28, %v904_v56  ;;  %v922_v11 = vadd.f32 %v920_v13, %v905_v5  ;;  %v824_v14 = vpop.permute.xlu1 %823  ;;  %v822_v6 = vpop.permute.xlu0 %821  ;;  %v1050_v13 = vstv %s1319_s24  ;;  %s1502_s24 = scalar_lea.vmem %s1172_s16, 32 }
 0x193   : > { %v829_v19 = vsel %vm827_vm14, %v822_v6, %v824_v14  ;;  %p1503_p1 = scmp.ne.s32.totalorder %s1172_s16, %s1502_s24 }
 0x194   : > { %v832_v22 = vmul.f32 %v831_v3, %v829_v19 }
 0x195   : > { %p1504_p6 = pnand %p1503_p1, %p2667_p4 }
 0x196   : > { %v834_v58 = vadd.f32 %v832_v22, %v819_v32  ;;  %v924_v57 = vpop.permute.xlu1 %923  ;;  %v826_v43 = vpop.permute.xlu0 %825 }
 0x197   : > { %v828_v24 = vsel %vm827_vm14, %v824_v14, %v826_v43  ;;  %p1505_p8 = pneg %p1504_p6 }
 0x198   : > { %v833_v27 = vmul.f32 %v831_v3, %v828_v24 }
 0x19a   : > { %v835_v51 = vadd.f32 %v833_v27, %v820_v36  ;;  %v928_v62 = vpop.permute.xlu1 %927  ;;  %v926_v33 = vpop.permute.xlu0 %925  ;;  %v861_v27 = vstv %s1308_s29  ;;  %s1506_s29 = sshll.u32 %s1640_s12, 4  ;;  %s1507_s29 = int_to_ptr.vmem [resolvable:$false] %s1506_s29 }
 0x19b   : > { %v930_v15 = vsel %vm929_vm15, %v926_v33, %v928_v62  ;;  %v931_v25 = vsel %vm929_vm15, %v924_v57, %v926_v33  ;;  %vm974_vm15 = vcmp.lt.s32.totalorder %v1990_v10, 94  ;;  %p1509_p9 = scmp.lt.s32.totalorder %s1172_s16, %s1507_s29 }
 0x19c   : > { %v934_v16 = vmul.f32 %v933_v49, %v931_v25  ;;  %v935_v38 = vmul.f32 %v933_v49, %v930_v15 }
 0x19e   : > { %v936_v18 = vadd.f32 %v934_v16, %v921_v31  ;;  %v937_v35 = vadd.f32 %v935_v38, %v922_v11  ;;  %v1013_v52 = vpop.permute.xlu1 %1012  ;;  %v1011_v4 = vpop.permute.xlu0 %1010  ;;  %v963_v38 = vstv %s1314_s26  ;;  %s1508_s26 = scalar_lea.vmem %s1507_s29, 64 }
 0x19f   : > { %v1018_v2 = vsel %vm1016_vm0, %v1011_v4, %v1013_v52  ;;  %p1510_p3 = scmp.lt.s32.totalorder %s1508_s26, %s1502_s24 }
 0x1a0   : > { %v1021_v39 = vmul.f32 %v1020_v63, %v1018_v2 }
 0x1a1   : > { %p1511_p5 = por %p1510_p3, %p1509_p9 }
 0x1a2   : > { %v1026_v7 = vpop.permute.xlu1 %1025  ;;  %v1015_v23 = vpop.permute.xlu0 %1014 }
 0x1a3   : > { %v1017_v34 = vsel %vm1016_vm0, %v1013_v52, %v1015_v23  ;;  %p1512_p7 = pnand %p1511_p5, %p1505_p8 }
 0x1a4   : > { %v1022_v61 = vmul.f32 %v1020_v63, %v1017_v34 }
 0x1a6   : > { %v1030_v26 = vpop.permute.xlu1 %1029  ;;  %v1028_v41 = vpop.permute.xlu0 %1027 }
 0x1a7   : > { %v1032_v48 = vsel %vm1031_vm1, %v1028_v41, %v1030_v26  ;;  %v1033_v29 = vsel %vm1031_vm1, %v1026_v7, %v1028_v41  ;;  %v1065_v41 = vstv %s1320_s17  ;;  %vm1076_vm1 = vcmp.lt.s32.totalorder %v1990_v10, 109 }
 0x1a8   : > { %v1036_v42 = vmul.f32 %v1035_v0, %v1033_v29  ;;  %v1037_v37 = vmul.f32 %v1035_v0, %v1032_v48  ;;  %v881_v48 = vadd.f32 1.0, %v2030_v20 }
 0x1aa   : > { %v1038_v30 = vadd.f32 %v1036_v42, %v1021_v39  ;;  %v1039_v9 = vadd.f32 %v1037_v37, %v1022_v61  ;;  %v839_v32 = vpop.permute.xlu1 %838  ;;  %v837_v36 = vpop.permute.xlu0 %836  ;;  %vm883_vm10 = vcmp.ge.f32.partialorder %v881_v48, 0.0  ;;  %vm885_vm11 = vcmp.lt.f32.partialorder %v881_v48, 16.0 }
 0x1ab   : > { %v844_v44 = vsel %vm842_vm3, %v837_v36, %v839_v32  ;;  %vm887_vm13 = vmand %vm883_vm10, %vm885_vm11  ;;  %vm1106_vm11 = vcmp.lt.s32.totalorder %v1990_v10, 77 }
 0x1ac   : > { %v847_v47 = vmul.f32 %v846_v8, %v844_v44 }
 0x1ae   : > { %v849_v40 = vadd.f32 %v847_v47, %v834_v58  ;;  %v939_v46 = vpop.permute.xlu1 %938  ;;  %v841_v53 = vpop.permute.xlu0 %840 }
 0x1af   : > { %v843_v17 = vsel %vm842_vm3, %v839_v32, %v841_v53  ;;  %vm989_vm3 = vcmp.lt.s32.totalorder %v1990_v10, 78 }
 0x1b0   : > { %v848_v59 = vmul.f32 %v846_v8, %v843_v17 }
 0x1b2   : > { %v850_v60 = vadd.f32 %v848_v59, %v835_v51  ;;  %v943_v50 = vpop.permute.xlu1 %942  ;;  %v941_v45 = vpop.permute.xlu0 %940 }
 0x1b3   : > { %v945_v1 = vsel %vm944_vm4, %v941_v45, %v943_v50  ;;  %v946_v56 = vsel %vm944_vm4, %v939_v46, %v941_v45 }
 0x1b4   : > { %v949_v5 = vmul.f32 %v948_v12, %v946_v56  ;;  %v950_v28 = vmul.f32 %v948_v12, %v945_v1  ;;  %v978_v56 = vstv %s1315_s5 }
 0x1b6   : > { %v951_v3 = vadd.f32 %v949_v5, %v936_v18  ;;  %v952_v31 = vadd.f32 %v950_v28, %v937_v35  ;;  %v1043_v11 = vpop.permute.xlu1 %1042  ;;  %v1041_v14 = vpop.permute.xlu0 %1040 }
 0x1b7   : > { %v1048_v6 = vsel %vm1046_vm5, %v1041_v14, %v1043_v11 }
 0x1b8   : > { %v1051_v19 = vmul.f32 %v1050_v13, %v1048_v6 }
 0x1ba   : > { %v1053_v22 = vadd.f32 %v1051_v19, %v1038_v30  ;;  %v852_v58 = vpop.permute.xlu1 %851 }
 0x1bb   : > { %v1045_v57 = vpop.permute.xlu0 %1044 }
 0x1bc   : > { %v1047_v43 = vsel %vm1046_vm5, %v1043_v11, %v1045_v57 }
 0x1bd   : > { %v1052_v24 = vmul.f32 %v1050_v13, %v1047_v43 }
 0x1be   : > { %v856_v51 = vpop.permute.xlu1 %855 }
 0x1bf   : > { %v1054_v49 = vadd.f32 %v1052_v24, %v1039_v9  ;;  %v854_v62 = vpop.permute.xlu0 %853  ;;  %v876_v9 = vstv %s2505_s30 }
 0x1c0   : > { %v858_v33 = vsel %vm857_vm6, %v854_v62, %v856_v51  ;;  %v859_v15 = vsel %vm857_vm6, %v852_v58, %v854_v62 }
 0x1c1   : > { %v862_v25 = vmul.f32 %v861_v27, %v859_v15  ;;  %v863_v16 = vmul.f32 %v861_v27, %v858_v33  ;;  %v999_v15 = vadd.f32 2.0, %v2032_v21 }
 0x1c2   : > { %v956_v52 = vpop.permute.xlu1 %955 }
 0x1c3   : > { %v864_v18 = vadd.f32 %v862_v25, %v849_v40  ;;  %v865_v35 = vadd.f32 %v863_v16, %v850_v60  ;;  %v954_v4 = vpop.permute.xlu0 %953  ;;  %v882_v40 = vadd.f32 1.0, %v2032_v21  ;;  %v993_v16 = vstv %s1316_s21 }
 0x1c4   : > { %v961_v2 = vsel %vm959_vm7, %v954_v4, %v956_v52  ;;  %vm1001_vm6 = vcmp.ge.f32.partialorder %v999_v15, 0.0 }
 0x1c5   : > { %v964_v7 = vmul.f32 %v963_v38, %v961_v2  ;;  %vm884_vm12 = vcmp.ge.f32.partialorder %v882_v40, 0.0  ;;  %vm886_vm14 = vcmp.lt.f32.partialorder %v882_v40, 16.0 }
 0x1c6   : > { %v1056_v34 = vpop.permute.xlu1 %1055  ;;  %vm888_vm0 = vmand %vm884_vm12, %vm886_vm14 }
 0x1c7   : > { %v966_v23 = vadd.f32 %v964_v7, %v951_v3  ;;  %v958_v63 = vpop.permute.xlu0 %957 }
 0x1c8   : > { %v960_v0 = vsel %vm959_vm7, %v956_v52, %v958_v63  ;;  %vm1003_vm7 = vcmp.lt.f32.partialorder %v999_v15, 16.0 }
 0x1c9   : > { %v965_v26 = vmul.f32 %v963_v38, %v960_v0  ;;  %vm1005_vm10 = vmand %vm1001_vm6, %vm1003_vm7 }
 0x1ca   : > { %v1060_v39 = vpop.permute.xlu1 %1059 }
 0x1cb   : > { %v967_v29 = vadd.f32 %v965_v26, %v952_v31  ;;  %v1058_v61 = vpop.permute.xlu0 %1057 }
 0x1cc   : > { %v1062_v42 = vsel %vm1061_vm8, %v1058_v61, %v1060_v39  ;;  %v1063_v37 = vsel %vm1061_vm8, %v1056_v34, %v1058_v61 }
 0x1cd   : > { %v1066_v8 = vmul.f32 %v1065_v41, %v1063_v37  ;;  %v1067_v30 = vmul.f32 %v1065_v41, %v1062_v42  ;;  %v1115_v37 = vadd.f32 3.0, %v2030_v20 }
 0x1ce   : > { %v869_v44 = vpop.permute.xlu1 %868 }
 0x1cf   : > { %v1068_v32 = vadd.f32 %v1066_v8, %v1053_v22  ;;  %v1069_v36 = vadd.f32 %v1067_v30, %v1054_v49  ;;  %v867_v47 = vpop.permute.xlu0 %866  ;;  %v1080_v22 = vstv %s2514_s19  ;;  %v998_v49 = vadd.f32 2.0, %v2030_v20 }
 0x1d0   : > { %v874_v46 = vsel %vm872_vm9, %v867_v47, %v869_v44  ;;  %v1110_v47 = vstv %s2534_s0  ;;  %vm1119_vm12 = vcmp.lt.f32.partialorder %v1115_v37, 16.0 }
 0x1d1   : > { %v877_v53 = vmul.f32 %v876_v9, %v874_v46  ;;  %vm1000_vm4 = vcmp.ge.f32.partialorder %v998_v49, 0.0  ;;  %vm1002_vm5 = vcmp.lt.f32.partialorder %v998_v49, 16.0 }
 0x1d2   : > { %v969_v59 = vpop.permute.xlu1 %968  ;;  %vm1004_vm8 = vmand %vm1000_vm4, %vm1002_vm5 }
 0x1d3   : > { %v879_v17 = vadd.f32 %v877_v53, %v864_v18  ;;  %v871_v12 = vpop.permute.xlu0 %870 }
 0x1d4   : > { %v873_v60 = vsel %vm872_vm9, %v869_v44, %v871_v12  ;;  %vm1091_vm9 = vcmp.lt.s32.totalorder %v1990_v10, 93 }
 0x1d5   : > { %v889_v50 = vsel %vm887_vm13, %v879_v17, 0.0  ;;  %v878_v45 = vmul.f32 %v876_v9, %v873_v60  ;;  %vm1117_vm13 = vcmp.ge.f32.partialorder %v1115_v37, 0.0 }
 0x1d6   : > { %v891_v1 = vadd.f32 %v889_v50, %v2473_v54  ;;  %v973_v28 = vpop.permute.xlu1 %972 }
 0x1d7   : > { %v880_v5 = vadd.f32 %v878_v45, %v865_v35  ;;  %v971_v13 = vpop.permute.xlu0 %970 }
 0x1d8   : > { %v975_v3 = vsel %vm974_vm15, %v971_v13, %v973_v28  ;;  %v976_v31 = vsel %vm974_vm15, %v969_v59, %v971_v13 }
 0x1d9   : > { %v890_v11 = vsel %vm888_vm0, %v880_v5, 0.0  ;;  %v979_v14 = vmul.f32 %v978_v56, %v976_v31  ;;  %v980_v6 = vmul.f32 %v978_v56, %v975_v3  ;;  %vm1121_vm0 = vmand %vm1117_vm13, %vm1119_vm12 }
 0x1da   : > { %v892_v19 = vadd.f32 %v890_v11, %v2479_v55  ;;  %v1073_v43 = vpop.permute.xlu1 %1072 }
 0x1db   : > { %v981_v58 = vadd.f32 %v979_v14, %v966_v23  ;;  %v982_v57 = vadd.f32 %v980_v6, %v967_v29  ;;  %v1071_v54 = vpop.permute.xlu0 %1070  ;;  %v1095_v23 = vstv %s2526_s8 }
 0x1dc   : > { %v1078_v24 = vsel %vm1076_vm1, %v1071_v54, %v1073_v43 }
 0x1dd   : > { %v1081_v27 = vmul.f32 %v1080_v22, %v1078_v24 }
 0x1de   : > { %v984_v62 = vpop.permute.xlu1 %983 }
 0x1df   : > { %v1083_v51 = vadd.f32 %v1081_v27, %v1068_v32  ;;  %v1075_v33 = vpop.permute.xlu0 %1074  ;;  %v1116_v32 = vadd.f32 3.0, %v2032_v21 }
 0x1e0   : > { %v1077_v55 = vsel %vm1076_vm1, %v1073_v43, %v1075_v33 }
 0x1e1   : > { %v1082_v25 = vmul.f32 %v1080_v22, %v1077_v55  ;;  %vm1118_vm14 = vcmp.ge.f32.partialorder %v1116_v32, 0.0  ;;  %vm1120_vm15 = vcmp.lt.f32.partialorder %v1116_v32, 16.0 }
 0x1e2   : > { %v988_v18 = vpop.permute.xlu1 %987  ;;  %vm1122_vm1 = vmand %vm1118_vm14, %vm1120_vm15 }
 0x1e3   : > { %v1084_v38 = vadd.f32 %v1082_v25, %v1069_v36  ;;  %v986_v35 = vpop.permute.xlu0 %985 }
 0x1e4   : > { %v990_v52 = vsel %vm989_vm3, %v986_v35, %v988_v18  ;;  %v991_v4 = vsel %vm989_vm3, %v984_v62, %v986_v35 }
 0x1e5   : > { %v994_v2 = vmul.f32 %v993_v16, %v991_v4  ;;  %v995_v7 = vmul.f32 %v993_v16, %v990_v52 }
 0x1e6   : > { %v1088_v0 = vpop.permute.xlu1 %1087 }
 0x1e7   : > { %v996_v34 = vadd.f32 %v994_v2, %v981_v58  ;;  %v997_v63 = vadd.f32 %v995_v7, %v982_v57  ;;  %v1086_v26 = vpop.permute.xlu0 %1085  ;;  %v2665_v58 = vld [vmem:[#allocation14_spill] sm:$0xff] }
 0x1e8   : > { %v1093_v41 = vsel %vm1091_vm9, %v1086_v26, %v1088_v0 }
 0x1e9   : > { %v1006_v48 = vsel %vm1004_vm8, %v996_v34, 0.0  ;;  %v1007_v29 = vsel %vm1005_vm10, %v997_v63, 0.0  ;;  %v1096_v39 = vmul.f32 %v1095_v23, %v1093_v41 }
 0x1ea   : > { %v1008_v61 = vadd.f32 %v1006_v48, %v891_v1  ;;  %v1009_v42 = vadd.f32 %v1007_v29, %v892_v19  ;;  %v1101_v30 = vpop.permute.xlu1 %1100 }
 0x1eb   : > { %v1098_v8 = vadd.f32 %v1096_v39, %v1083_v51  ;;  %v1090_v9 = vpop.permute.xlu0 %1089 }
 0x1ec   : > { %v1092_v36 = vsel %vm1091_vm9, %v1088_v0, %v1090_v9 }
 0x1ed   : > { %v1097_v44 = vmul.f32 %v1095_v23, %v1092_v36 }
 0x1ee   : > { %v1105_v46 = vpop.permute.xlu1 %1104 }
 0x1ef   : > { %v1099_v40 = vadd.f32 %v1097_v44, %v1084_v38  ;;  %v1103_v53 = vpop.permute.xlu0 %1102 }
 0x1f0   : > { %v1107_v20 = vsel %vm1106_vm11, %v1103_v53, %v1105_v46  ;;  %v1108_v17 = vsel %vm1106_vm11, %v1101_v30, %v1103_v53 }
 0x1f1   : > { %v1111_v59 = vmul.f32 %v1110_v47, %v1108_v17  ;;  %v1112_v12 = vmul.f32 %v1110_v47, %v1107_v20 }
 0x1f3   : > { %v1113_v21 = vadd.f32 %v1111_v59, %v1098_v8  ;;  %v1114_v60 = vadd.f32 %v1112_v12, %v1099_v40 }
 0x1f5   : > { %v1123_v50 = vsel %vm1121_vm0, %v1113_v21, 0.0  ;;  %v1124_v45 = vsel %vm1122_vm1, %v1114_v60, 0.0 }
 0x1f6   : > { %v1125_v10 = vadd.f32 %v1123_v50, %v1008_v61  ;;  %v1126_v1 = vadd.f32 %v1124_v45, %v1009_v42 }
 0x1f8   : > { %v1127_v56 = vsub.f32 0.0, %v1125_v10  ;;  %v1128_v5 = vsub.f32 0.0, %v1126_v1 }
 0x1fa   : > { %v1129_v28 = vmul.f32 1.442695, %v1127_v56  ;;  %v1131_v13 = vmul.f32 1.442695, %v1128_v5 }
 0x1fc   : > { %1455 = vpow2.f32 %v1129_v28 }
 0x1fd   : > { %1457 = vpow2.f32 %v1131_v13 }
 0x209   : > { %v1456_v3 = vpop.eup %1455 }
 0x20a   : > { %v1458_v31 = vpop.eup %1457  ;;  %v1133_v11 = vadd.f32 1.0, %v1456_v3 }
 0x20b   : > { %v1134_v14 = vadd.f32 1.0, %v1458_v31 }
 0x20c   : > { %1459 = vrcp.f32 %v1133_v11 }
 0x20d   : > { %1461 = vrcp.f32 %v1134_v14 }
 0x219   : > { %v1460_v6 = vpop.eup %1459 }
 0x21a   : > { %v1462_v19 = vpop.eup %1461 }
 0x21b   : > { %v1139_v22 = vcombine.low %v1460_v6, %v1462_v19 }
 0x21d   : > { %v1146_v57 = vrot.slane %v1139_v22, %v2665_v58 }
 0x21f   : > { %v1153_v43 = vrot.slane %v1146_v57, %v2665_v58 }
 0x221   : > { %1155 = vst.msk [vmem:[%s187_s15] sm:$0x3] %vm1784_vm2, %v1153_v43 }
 0x222   : > { %1515 = shalt.err (!%p1512_p7)
}
 0x223   : > { %s1516_s17 = scalar_lea.hbm %s1169_s23, 32  ;;  %s1520_s5 = scalar_lea.hbm %s2591_s2, 64 }
 0x224   : > { %p1517_p2 = scmp.ne.s32.totalorder %s1169_s23, %s1516_s17  ;;  %p1521_p13 = scmp.lt.s32.totalorder %s1169_s23, %s2591_s2 }
 0x225   : > { %p1522_p0 = scmp.lt.s32.totalorder %s1520_s5, %s1516_s17 }
 0x226   : > { %p1518_p11 = pnand %p1517_p2, %p2667_p4 }
 0x227   : > { %p1523_p10 = por %p1522_p0, %p1521_p13 }
 0x228   : > { %p1519_p12 = pneg %p1518_p11 }
 0x22a   : > { %p1524_p1 = pnand %p1523_p10, %p1519_p12 }
 0x22c   : > { %1527 = shalt.err (!%p1524_p1)
}
 0x22d   : > { %1337 = dma.vmem_to_hbm [thread:$0]  (%p2667_p4), %s1172_s16, 32, %s1169_s23, %s1157_s3  }
 0x22e PF: > { %s1183_s8 = sand.u32 1, %s1566_s9   ;;  %p2668_p6 = scmp.ne.s32.totalorder %s2607_s20, 0 }
 0x22f   : > { %p2669_p8 = scmp.ge.s32.totalorder %s1586_s14, 2  ;;  %s1184_s0 = scalar_lea.sflag [#allocation6], %s1183_s8 }
 0x231   : > { %p1348_p9 = pnand %p2669_p8, %p2668_p6 }
 0x233   : > { %p1349_p3 = pneg %p1348_p9 }
 0x235   : > { %1561 = dma.done.wait (%p1349_p3), %s1184_s0, 32  }
 0x236   : > { %1563 = vsyncadd (%p1349_p3), %s1184_s0, 4294967264  ;;  %s19_s14 = sadd.s32 1, %s1586_s14   ;;  %s2670_s9 = smov %s1570_s10 }
 0x237   : > { %p16_p5 = scmp.ge.s32.totalorder %s19_s14, 4   ;;  %s2671_s10 = smov %s1574_s11 }
 0x238   : > { %s2672_s11 = smov %s1744_s4  ;;  %s2673_s12 = smov %s1582_s13 }
 0x239   : > { %s2674_s13 = smov %s2676_s22  ;;  %18 = sbr.rel (!%p16_p5) target bundleno = 9 (0x9), region = 90 }
 0x23e   :  { %1189 = vsyncpa [#allocation5], 1 }
 0x23f   :  { %1191 = vsyncpa [#allocation5 + $0x1], 1 }
 0x240   :  { %1192 = vsyncpa [#allocation6], 1 }
 0x241   :  { %1194 = vsyncpa [#allocation6 + $0x1], 1 }
 0x242   :  { %1195 = vsyncpa [#allocation7], 1 }
 0x243   :  { %1197 = vsyncpa [#allocation7 + $0x1], 1 }

</bundles_post_ra>
